<compile_context>
chip_gen: v7x
topology: tpu7x:2x2x1
jax: 0.10.0
libtpu: 0.0.40
codegen_flags: <defaults>
</compile_context>

<pallas_src>
import jax
import jax.numpy as jnp
from jax import lax
from jax.experimental import pallas as pl
from jax.experimental.pallas import tpu as pltpu

# ---- module hyperparameters (derived from the PyTorch script) ----
text = '\nhello world good morning\nsee you later\nhow are you doing today\nit is a beautiful day\ngood night and sweet dreams\n'
words = text.split()
vocab = sorted(set(words))          # deterministic ordering of the vocab
VOCAB_SIZE = len(vocab)             # 20
HIDDEN = 50
NUM_LAYERS = 1
OUTPUT_SIZE = VOCAB_SIZE

GP = 128                            # per-gate lane width (padded to a full vreg lane block)

# Packed gate slot order [i, f, o, g]; PyTorch row order is [i, f, g, o].
_GATE_ORDER = (0, 1, 3, 2)


def _round_up(x, m):
    return ((x + m - 1) // m) * m


def _lstm_kernel(x2d_ref, h0_ref, c0_ref, wih_ref, whh_ref, b_ref,
                 wdec_ref, bdec_ref,
                 logits_ref, hn_ref, cn_ref,
                 xg_scr):
    B_pad = h0_ref.shape[0]
    gp = b_ref.shape[-1] // 4
    T = x2d_ref.shape[0] // B_pad

    # Hoisted input projection for all timesteps in one MXU matmul (bf16 operands,
    # f32 accumulation): x_gates[t*B_pad:(t+1)*B_pad] = x_t @ W_ih^T + (b_ih + b_hh)
    xg_scr[...] = (jnp.dot(x2d_ref[...].astype(jnp.bfloat16), wih_ref[...],
                           preferred_element_type=jnp.float32)
                   + b_ref[...])

    def step(t, carry):
        h, c = carry
        # Read W_hh through the ref so the load folds into the matmul each step
        # (keeps vreg pressure low across the unrolled recurrence).
        gates = (xg_scr[pl.ds(t * B_pad, B_pad), :]
                 + jnp.dot(h.astype(jnp.bfloat16), whh_ref[...],
                           preferred_element_type=jnp.float32))
        # Packed gate order [i, f, o, g]: one sigmoid over a contiguous 3*gp slice,
        # one tanh for the candidate gate.
        sig = jax.nn.sigmoid(gates[:, 0:3 * gp])
        i_g = sig[:, 0 * gp:1 * gp]
        f_g = sig[:, 1 * gp:2 * gp]
        o_g = sig[:, 2 * gp:3 * gp]
        g_g = jnp.tanh(gates[:, 3 * gp:4 * gp])
        c_new = f_g * c + i_g * g_g
        h_new = o_g * jnp.tanh(c_new)
        return h_new, c_new

    h, c = lax.fori_loop(0, T, step, (h0_ref[...], c0_ref[...]), unroll=True)

    hn_ref[...] = h
    cn_ref[...] = c
    # Decoder on the last hidden state (matches output[:, -1, :] with batch_first).
    logits_ref[...] = (jnp.dot(h.astype(jnp.bfloat16), wdec_ref[...],
                               preferred_element_type=jnp.float32)
                       + bdec_ref[...])


def _pack_gate_weights(w, H, H_pad, gp):
    """(4H, H) PyTorch [i;f;g;o] rows -> (H_pad, 4*gp) bf16 with packed slot order
    [i, f, o, g]; slot s occupies lanes [s*gp, s*gp + H)."""
    out = jnp.zeros((H_pad, 4 * gp), jnp.float32)
    for slot, g in enumerate(_GATE_ORDER):
        out = out.at[:H, slot * gp:slot * gp + H].set(w[g * H:(g + 1) * H, :].T)
    return out.astype(jnp.bfloat16)


def _pack_gate_bias(b, H, gp):
    out = jnp.zeros((1, 4 * gp), jnp.float32)
    for slot, g in enumerate(_GATE_ORDER):
        out = out.at[0, slot * gp:slot * gp + H].set(b[g * H:(g + 1) * H])
    return out  # stays f32 (added after the f32-accumulated matmul)


def pack_params(params):
    """One-time packing of weights into the kernel's padded / bf16 layouts."""
    emb = params["emb"].astype(jnp.float32)
    H = emb.shape[1]
    V = params["w_dec"].shape[0]
    H_pad = _round_up(H, 128)
    V_pad = _round_up(V, 128)
    gp = max(GP, _round_up(H, 128))

    wdec_p = (jnp.zeros((H_pad, V_pad), jnp.float32)
              .at[:H, :V].set(params["w_dec"].T.astype(jnp.float32))
              .astype(jnp.bfloat16))
    bdec_p = jnp.zeros((1, V_pad), jnp.float32).at[0, :V].set(
        params["b_dec"].astype(jnp.float32))

    return {
        "emb": emb,
        "wih": _pack_gate_weights(params["w_ih"].astype(jnp.float32), H, H_pad, gp),
        "whh": _pack_gate_weights(params["w_hh"].astype(jnp.float32), H, H_pad, gp),
        "bias": _pack_gate_bias((params["b_ih"] + params["b_hh"]).astype(jnp.float32), H, gp),
        "wdec": wdec_p,
        "bdec": bdec_p,
        "dims": (H, V, H_pad, V_pad, gp),
    }


def lstm_model_forward(token_ids, hidden, packed):
    """Replicates LSTMModel.forward.

    token_ids: (B, T) int32
    hidden   : (h0, c0), each (num_layers=1, B, H)
    packed   : output of pack_params()
    returns  : (logits (B, V), (h_n, c_n))
    """
    H, V, H_pad, V_pad, gp = packed["dims"]
    h0, c0 = hidden
    B, T = token_ids.shape
    assert T >= 1

    B_pad = _round_up(B, 8)

    # Embedding gather (glue, plain JAX) -> time-major, padded, flattened (T*B_pad, H_pad)
    embedded = packed["emb"][token_ids]                            # (B, T, H) f32
    x_tm = jnp.transpose(embedded, (1, 0, 2))                      # (T, B, H)
    x_pad = jnp.zeros((T, B_pad, H_pad), jnp.float32).at[:, :B, :H].set(x_tm)
    x2d = x_pad.reshape(T * B_pad, H_pad)

    h0_p = jnp.zeros((B_pad, H_pad), jnp.float32).at[:B, :H].set(h0[0].astype(jnp.float32))
    c0_p = jnp.zeros((B_pad, H_pad), jnp.float32).at[:B, :H].set(c0[0].astype(jnp.float32))

    vmem_spec = pl.BlockSpec(memory_space=pltpu.MemorySpace.VMEM)

    logits_p, hn_p, cn_p = pl.pallas_call(
        _lstm_kernel,
        out_shape=(
            jax.ShapeDtypeStruct((B_pad, V_pad), jnp.float32),
            jax.ShapeDtypeStruct((B_pad, H_pad), jnp.float32),
            jax.ShapeDtypeStruct((B_pad, H_pad), jnp.float32),
        ),
        in_specs=[vmem_spec] * 8,
        out_specs=(vmem_spec, vmem_spec, vmem_spec),
        scratch_shapes=[pltpu.VMEM((T * B_pad, 4 * gp), jnp.float32)],
    )(x2d, h0_p, c0_p, packed["wih"], packed["whh"], packed["bias"],
      packed["wdec"], packed["bdec"])

    logits = logits_p[:B, :V]
    h_n = hn_p[:B, :H][None, :, :]
    c_n = cn_p[:B, :H][None, :, :]
    return logits, (h_n, c_n)


def init_params(key, vocab_size, hidden_size, output_size):
    ks = jax.random.split(key, 7)
    s = 0.1
    return {
        "emb":   s * jax.random.normal(ks[0], (vocab_size, hidden_size), jnp.float32),
        "w_ih":  s * jax.random.normal(ks[1], (4 * hidden_size, hidden_size), jnp.float32),
        "w_hh":  s * jax.random.normal(ks[2], (4 * hidden_size, hidden_size), jnp.float32),
        "b_ih":  s * jax.random.normal(ks[3], (4 * hidden_size,), jnp.float32),
        "b_hh":  s * jax.random.normal(ks[4], (4 * hidden_size,), jnp.float32),
        "w_dec": s * jax.random.normal(ks[5], (output_size, hidden_size), jnp.float32),
        "b_dec": s * jax.random.normal(ks[6], (output_size,), jnp.float32),
    }


if __name__ == "__main__":
    key = jax.random.PRNGKey(0)
    k_param, k_tok = jax.random.split(key)

    B, T = 2, 8
    params = init_params(k_param, VOCAB_SIZE, HIDDEN, OUTPUT_SIZE)
    packed = pack_params(params)          # one-time weight packing (not in the hot path)

    token_ids = jax.random.randint(k_tok, (B, T), 0, VOCAB_SIZE, dtype=jnp.int32)
    # init_hidden(batch_size): zeros
    hidden = (jnp.zeros((NUM_LAYERS, B, HIDDEN), jnp.float32),
              jnp.zeros((NUM_LAYERS, B, HIDDEN), jnp.float32))

    logits, (h_n, c_n) = lstm_model_forward(token_ids, hidden, packed)
    jax.block_until_ready((logits, h_n, c_n))

    assert logits.shape == (B, OUTPUT_SIZE)
    assert h_n.shape == (NUM_LAYERS, B, HIDDEN)
    assert c_n.shape == (NUM_LAYERS, B, HIDDEN)
    assert bool(jnp.all(jnp.isfinite(logits)))
    print("KERNEL_OK")
</pallas_src>

<mosaic_0001>
module attributes {stable_mosaic.version = 11 : i64} {
  func.func @_lstm_kernel(%arg0: memref<64x128xf32, #tpu.memory_space<vmem>>, %arg1: memref<8x128xf32, #tpu.memory_space<vmem>>, %arg2: memref<8x128xf32, #tpu.memory_space<vmem>>, %arg3: memref<128x512xbf16, #tpu.memory_space<vmem>>, %arg4: memref<128x512xbf16, #tpu.memory_space<vmem>>, %arg5: memref<1x512xf32, #tpu.memory_space<vmem>>, %arg6: memref<128x128xbf16, #tpu.memory_space<vmem>>, %arg7: memref<1x128xf32, #tpu.memory_space<vmem>>, %arg8: memref<8x128xf32, #tpu.memory_space<vmem>>, %arg9: memref<8x128xf32, #tpu.memory_space<vmem>>, %arg10: memref<8x128xf32, #tpu.memory_space<vmem>>, %arg11: memref<64x512xf32, #tpu.memory_space<vmem>>) attributes {dimension_semantics = [], scalar_prefetch = 0 : i64, scratch_operands = 1 : i64, tpu.core_type = #tpu.core_type<tc>} {
    %c0 = arith.constant 0 : index
    %c0_0 = arith.constant 0 : index
    %0 = vector.load %arg0[%c0, %c0_0] : memref<64x128xf32, #tpu.memory_space<vmem>>, vector<64x128xf32>
    %1 = arith.truncf %0 : vector<64x128xf32> to vector<64x128xbf16>
    %c0_1 = arith.constant 0 : index
    %c0_2 = arith.constant 0 : index
    %2 = vector.load %arg3[%c0_1, %c0_2] : memref<128x512xbf16, #tpu.memory_space<vmem>>, vector<128x512xbf16>
    %cst = arith.constant dense<0.000000e+00> : vector<64x512xf32>
    %3 = tpu.matmul %1, %2, %cst {dimension_numbers = #tpu.dot_dimension_numbers<[1], [0], [0], [1], [0, 0, 1, 1], [], []>} : vector<64x128xbf16>, vector<128x512xbf16>, vector<64x512xf32> -> vector<64x512xf32>
    %c0_3 = arith.constant 0 : index
    %c0_4 = arith.constant 0 : index
    %4 = vector.load %arg5[%c0_3, %c0_4] : memref<1x512xf32, #tpu.memory_space<vmem>>, vector<1x512xf32>
    %5 = vector.broadcast %4 : vector<1x512xf32> to vector<64x512xf32>
    %6 = arith.addf %3, %5 : vector<64x512xf32>
    %c0_5 = arith.constant 0 : index
    %c0_6 = arith.constant 0 : index
    %7 = vector.load %arg11[%c0_5, %c0_6] : memref<64x512xf32, #tpu.memory_space<vmem>>, vector<64x512xf32>
    tpu.vector_store %arg11[%c0_5, %c0_6], %6 {strides = array<i32>} : memref<64x512xf32, #tpu.memory_space<vmem>>, vector<64x512xf32>,
    %c0_7 = arith.constant 0 : index
    %c0_8 = arith.constant 0 : index
    %8 = vector.load %arg1[%c0_7, %c0_8] : memref<8x128xf32, #tpu.memory_space<vmem>>, vector<8x128xf32>
    %c0_9 = arith.constant 0 : index
    %c0_10 = arith.constant 0 : index
    %9 = vector.load %arg2[%c0_9, %c0_10] : memref<8x128xf32, #tpu.memory_space<vmem>>, vector<8x128xf32>
    %c0_i32 = arith.constant 0 : i32
    %c8_i32 = arith.constant 8 : i32
    %10 = arith.muli %c0_i32, %c8_i32 : i32
    %11 = arith.index_cast %10 : i32 to index
    %c0_11 = arith.constant 0 : index
    %12 = vector.load %arg11[%11, %c0_11] : memref<64x512xf32, #tpu.memory_space<vmem>>, vector<8x512xf32>
    %13 = arith.truncf %8 : vector<8x128xf32> to vector<8x128xbf16>
    %c0_12 = arith.constant 0 : index
    %c0_13 = arith.constant 0 : index
    %14 = vector.load %arg4[%c0_12, %c0_13] : memref<128x512xbf16, #tpu.memory_space<vmem>>, vector<128x512xbf16>
    %cst_14 = arith.constant dense<0.000000e+00> : vector<8x512xf32>
    %15 = tpu.matmul %13, %14, %cst_14 {dimension_numbers = #tpu.dot_dimension_numbers<[1], [0], [0], [1], [0, 0, 1, 1], [], []>} : vector<8x128xbf16>, vector<128x512xbf16>, vector<8x512xf32> -> vector<8x512xf32>
    %16 = arith.addf %12, %15 : vector<8x512xf32>
    %17 = vector.extract_strided_slice %16 {offsets = [0, 0], sizes = [8, 384], strides = [1, 1]} : vector<8x512xf32> to vector<8x384xf32>
    %18 = arith.negf %17 : vector<8x384xf32>
    %19 = math.exp %18 : vector<8x384xf32>
    %cst_15 = arith.constant 1.000000e+00 : f32
    %20 = vector.broadcast %cst_15 : f32 to vector<8x384xf32>
    %21 = arith.addf %20, %19 : vector<8x384xf32>
    %22 = arith.divf %20, %21 : vector<8x384xf32>
    %23 = vector.extract_strided_slice %22 {offsets = [0, 0], sizes = [8, 128], strides = [1, 1]} : vector<8x384xf32> to vector<8x128xf32>
    %24 = vector.extract_strided_slice %22 {offsets = [0, 128], sizes = [8, 128], strides = [1, 1]} : vector<8x384xf32> to vector<8x128xf32>
    %25 = vector.extract_strided_slice %22 {offsets = [0, 256], sizes = [8, 128], strides = [1, 1]} : vector<8x384xf32> to vector<8x128xf32>
    %26 = vector.extract_strided_slice %16 {offsets = [0, 384], sizes = [8, 128], strides = [1, 1]} : vector<8x512xf32> to vector<8x128xf32>
    %27 = math.tanh %26 : vector<8x128xf32>
    %28 = arith.mulf %24, %9 : vector<8x128xf32>
    %29 = arith.mulf %23, %27 : vector<8x128xf32>
    %30 = arith.addf %28, %29 : vector<8x128xf32>
    %31 = math.tanh %30 : vector<8x128xf32>
    %32 = arith.mulf %25, %31 : vector<8x128xf32>
    %c1_i32 = arith.constant 1 : i32
    %c8_i32_16 = arith.constant 8 : i32
    %33 = arith.muli %c1_i32, %c8_i32_16 : i32
    %34 = arith.index_cast %33 : i32 to index
    %c0_17 = arith.constant 0 : index
    %35 = vector.load %arg11[%34, %c0_17] : memref<64x512xf32, #tpu.memory_space<vmem>>, vector<8x512xf32>
    %36 = arith.truncf %32 : vector<8x128xf32> to vector<8x128xbf16>
    %c0_18 = arith.constant 0 : index
    %c0_19 = arith.constant 0 : index
    %37 = vector.load %arg4[%c0_18, %c0_19] : memref<128x512xbf16, #tpu.memory_space<vmem>>, vector<128x512xbf16>
    %cst_20 = arith.constant dense<0.000000e+00> : vector<8x512xf32>
    %38 = tpu.matmul %36, %37, %cst_20 {dimension_numbers = #tpu.dot_dimension_numbers<[1], [0], [0], [1], [0, 0, 1, 1], [], []>} : vector<8x128xbf16>, vector<128x512xbf16>, vector<8x512xf32> -> vector<8x512xf32>
    %39 = arith.addf %35, %38 : vector<8x512xf32>
    %40 = vector.extract_strided_slice %39 {offsets = [0, 0], sizes = [8, 384], strides = [1, 1]} : vector<8x512xf32> to vector<8x384xf32>
    %41 = arith.negf %40 : vector<8x384xf32>
    %42 = math.exp %41 : vector<8x384xf32>
    %cst_21 = arith.constant 1.000000e+00 : f32
    %43 = vector.broadcast %cst_21 : f32 to vector<8x384xf32>
    %44 = arith.addf %43, %42 : vector<8x384xf32>
    %45 = arith.divf %43, %44 : vector<8x384xf32>
    %46 = vector.extract_strided_slice %45 {offsets = [0, 0], sizes = [8, 128], strides = [1, 1]} : vector<8x384xf32> to vector<8x128xf32>
    %47 = vector.extract_strided_slice %45 {offsets = [0, 128], sizes = [8, 128], strides = [1, 1]} : vector<8x384xf32> to vector<8x128xf32>
    %48 = vector.extract_strided_slice %45 {offsets = [0, 256], sizes = [8, 128], strides = [1, 1]} : vector<8x384xf32> to vector<8x128xf32>
    %49 = vector.extract_strided_slice %39 {offsets = [0, 384], sizes = [8, 128], strides = [1, 1]} : vector<8x512xf32> to vector<8x128xf32>
    %50 = math.tanh %49 : vector<8x128xf32>
    %51 = arith.mulf %47, %30 : vector<8x128xf32>
    %52 = arith.mulf %46, %50 : vector<8x128xf32>
    %53 = arith.addf %51, %52 : vector<8x128xf32>
    %54 = math.tanh %53 : vector<8x128xf32>
    %55 = arith.mulf %48, %54 : vector<8x128xf32>
    %c2_i32 = arith.constant 2 : i32
    %c8_i32_22 = arith.constant 8 : i32
    %56 = arith.muli %c2_i32, %c8_i32_22 : i32
    %57 = arith.index_cast %56 : i32 to index
    %c0_23 = arith.constant 0 : index
    %58 = vector.load %arg11[%57, %c0_23] : memref<64x512xf32, #tpu.memory_space<vmem>>, vector<8x512xf32>
    %59 = arith.truncf %55 : vector<8x128xf32> to vector<8x128xbf16>
    %c0_24 = arith.constant 0 : index
    %c0_25 = arith.constant 0 : index
    %60 = vector.load %arg4[%c0_24, %c0_25] : memref<128x512xbf16, #tpu.memory_space<vmem>>, vector<128x512xbf16>
    %cst_26 = arith.constant dense<0.000000e+00> : vector<8x512xf32>
    %61 = tpu.matmul %59, %60, %cst_26 {dimension_numbers = #tpu.dot_dimension_numbers<[1], [0], [0], [1], [0, 0, 1, 1], [], []>} : vector<8x128xbf16>, vector<128x512xbf16>, vector<8x512xf32> -> vector<8x512xf32>
    %62 = arith.addf %58, %61 : vector<8x512xf32>
    %63 = vector.extract_strided_slice %62 {offsets = [0, 0], sizes = [8, 384], strides = [1, 1]} : vector<8x512xf32> to vector<8x384xf32>
    %64 = arith.negf %63 : vector<8x384xf32>
    %65 = math.exp %64 : vector<8x384xf32>
    %cst_27 = arith.constant 1.000000e+00 : f32
    %66 = vector.broadcast %cst_27 : f32 to vector<8x384xf32>
    %67 = arith.addf %66, %65 : vector<8x384xf32>
    %68 = arith.divf %66, %67 : vector<8x384xf32>
    %69 = vector.extract_strided_slice %68 {offsets = [0, 0], sizes = [8, 128], strides = [1, 1]} : vector<8x384xf32> to vector<8x128xf32>
    %70 = vector.extract_strided_slice %68 {offsets = [0, 128], sizes = [8, 128], strides = [1, 1]} : vector<8x384xf32> to vector<8x128xf32>
    %71 = vector.extract_strided_slice %68 {offsets = [0, 256], sizes = [8, 128], strides = [1, 1]} : vector<8x384xf32> to vector<8x128xf32>
    %72 = vector.extract_strided_slice %62 {offsets = [0, 384], sizes = [8, 128], strides = [1, 1]} : vector<8x512xf32> to vector<8x128xf32>
    %73 = math.tanh %72 : vector<8x128xf32>
    %74 = arith.mulf %70, %53 : vector<8x128xf32>
    %75 = arith.mulf %69, %73 : vector<8x128xf32>
    %76 = arith.addf %74, %75 : vector<8x128xf32>
    %77 = math.tanh %76 : vector<8x128xf32>
    %78 = arith.mulf %71, %77 : vector<8x128xf32>
    %c3_i32 = arith.constant 3 : i32
    %c8_i32_28 = arith.constant 8 : i32
    %79 = arith.muli %c3_i32, %c8_i32_28 : i32
    %80 = arith.index_cast %79 : i32 to index
    %c0_29 = arith.constant 0 : index
    %81 = vector.load %arg11[%80, %c0_29] : memref<64x512xf32, #tpu.memory_space<vmem>>, vector<8x512xf32>
    %82 = arith.truncf %78 : vector<8x128xf32> to vector<8x128xbf16>
    %c0_30 = arith.constant 0 : index
    %c0_31 = arith.constant 0 : index
    %83 = vector.load %arg4[%c0_30, %c0_31] : memref<128x512xbf16, #tpu.memory_space<vmem>>, vector<128x512xbf16>
    %cst_32 = arith.constant dense<0.000000e+00> : vector<8x512xf32>
    %84 = tpu.matmul %82, %83, %cst_32 {dimension_numbers = #tpu.dot_dimension_numbers<[1], [0], [0], [1], [0, 0, 1, 1], [], []>} : vector<8x128xbf16>, vector<128x512xbf16>, vector<8x512xf32> -> vector<8x512xf32>
    %85 = arith.addf %81, %84 : vector<8x512xf32>
    %86 = vector.extract_strided_slice %85 {offsets = [0, 0], sizes = [8, 384], strides = [1, 1]} : vector<8x512xf32> to vector<8x384xf32>
    %87 = arith.negf %86 : vector<8x384xf32>
    %88 = math.exp %87 : vector<8x384xf32>
    %cst_33 = arith.constant 1.000000e+00 : f32
    %89 = vector.broadcast %cst_33 : f32 to vector<8x384xf32>
    %90 = arith.addf %89, %88 : vector<8x384xf32>
    %91 = arith.divf %89, %90 : vector<8x384xf32>
    %92 = vector.extract_strided_slice %91 {offsets = [0, 0], sizes = [8, 128], strides = [1, 1]} : vector<8x384xf32> to vector<8x128xf32>
    %93 = vector.extract_strided_slice %91 {offsets = [0, 128], sizes = [8, 128], strides = [1, 1]} : vector<8x384xf32> to vector<8x128xf32>
    %94 = vector.extract_strided_slice %91 {offsets = [0, 256], sizes = [8, 128], strides = [1, 1]} : vector<8x384xf32> to vector<8x128xf32>
    %95 = vector.extract_strided_slice %85 {offsets = [0, 384], sizes = [8, 128], strides = [1, 1]} : vector<8x512xf32> to vector<8x128xf32>
    %96 = math.tanh %95 : vector<8x128xf32>
    %97 = arith.mulf %93, %76 : vector<8x128xf32>
    %98 = arith.mulf %92, %96 : vector<8x128xf32>
    %99 = arith.addf %97, %98 : vector<8x128xf32>
    %100 = math.tanh %99 : vector<8x128xf32>
    %101 = arith.mulf %94, %100 : vector<8x128xf32>
    %c4_i32 = arith.constant 4 : i32
    %c8_i32_34 = arith.constant 8 : i32
    %102 = arith.muli %c4_i32, %c8_i32_34 : i32
    %103 = arith.index_cast %102 : i32 to index
    %c0_35 = arith.constant 0 : index
    %104 = vector.load %arg11[%103, %c0_35] : memref<64x512xf32, #tpu.memory_space<vmem>>, vector<8x512xf32>
    %105 = arith.truncf %101 : vector<8x128xf32> to vector<8x128xbf16>
    %c0_36 = arith.constant 0 : index
    %c0_37 = arith.constant 0 : index
    %106 = vector.load %arg4[%c0_36, %c0_37] : memref<128x512xbf16, #tpu.memory_space<vmem>>, vector<128x512xbf16>
    %cst_38 = arith.constant dense<0.000000e+00> : vector<8x512xf32>
    %107 = tpu.matmul %105, %106, %cst_38 {dimension_numbers = #tpu.dot_dimension_numbers<[1], [0], [0], [1], [0, 0, 1, 1], [], []>} : vector<8x128xbf16>, vector<128x512xbf16>, vector<8x512xf32> -> vector<8x512xf32>
    %108 = arith.addf %104, %107 : vector<8x512xf32>
    %109 = vector.extract_strided_slice %108 {offsets = [0, 0], sizes = [8, 384], strides = [1, 1]} : vector<8x512xf32> to vector<8x384xf32>
    %110 = arith.negf %109 : vector<8x384xf32>
    %111 = math.exp %110 : vector<8x384xf32>
    %cst_39 = arith.constant 1.000000e+00 : f32
    %112 = vector.broadcast %cst_39 : f32 to vector<8x384xf32>
    %113 = arith.addf %112, %111 : vector<8x384xf32>
    %114 = arith.divf %112, %113 : vector<8x384xf32>
    %115 = vector.extract_strided_slice %114 {offsets = [0, 0], sizes = [8, 128], strides = [1, 1]} : vector<8x384xf32> to vector<8x128xf32>
    %116 = vector.extract_strided_slice %114 {offsets = [0, 128], sizes = [8, 128], strides = [1, 1]} : vector<8x384xf32> to vector<8x128xf32>
    %117 = vector.extract_strided_slice %114 {offsets = [0, 256], sizes = [8, 128], strides = [1, 1]} : vector<8x384xf32> to vector<8x128xf32>
    %118 = vector.extract_strided_slice %108 {offsets = [0, 384], sizes = [8, 128], strides = [1, 1]} : vector<8x512xf32> to vector<8x128xf32>
    %119 = math.tanh %118 : vector<8x128xf32>
    %120 = arith.mulf %116, %99 : vector<8x128xf32>
    %121 = arith.mulf %115, %119 : vector<8x128xf32>
    %122 = arith.addf %120, %121 : vector<8x128xf32>
    %123 = math.tanh %122 : vector<8x128xf32>
    %124 = arith.mulf %117, %123 : vector<8x128xf32>
    %c5_i32 = arith.constant 5 : i32
    %c8_i32_40 = arith.constant 8 : i32
    %125 = arith.muli %c5_i32, %c8_i32_40 : i32
    %126 = arith.index_cast %125 : i32 to index
    %c0_41 = arith.constant 0 : index
    %127 = vector.load %arg11[%126, %c0_41] : memref<64x512xf32, #tpu.memory_space<vmem>>, vector<8x512xf32>
    %128 = arith.truncf %124 : vector<8x128xf32> to vector<8x128xbf16>
    %c0_42 = arith.constant 0 : index
    %c0_43 = arith.constant 0 : index
    %129 = vector.load %arg4[%c0_42, %c0_43] : memref<128x512xbf16, #tpu.memory_space<vmem>>, vector<128x512xbf16>
    %cst_44 = arith.constant dense<0.000000e+00> : vector<8x512xf32>
    %130 = tpu.matmul %128, %129, %cst_44 {dimension_numbers = #tpu.dot_dimension_numbers<[1], [0], [0], [1], [0, 0, 1, 1], [], []>} : vector<8x128xbf16>, vector<128x512xbf16>, vector<8x512xf32> -> vector<8x512xf32>
    %131 = arith.addf %127, %130 : vector<8x512xf32>
    %132 = vector.extract_strided_slice %131 {offsets = [0, 0], sizes = [8, 384], strides = [1, 1]} : vector<8x512xf32> to vector<8x384xf32>
    %133 = arith.negf %132 : vector<8x384xf32>
    %134 = math.exp %133 : vector<8x384xf32>
    %cst_45 = arith.constant 1.000000e+00 : f32
    %135 = vector.broadcast %cst_45 : f32 to vector<8x384xf32>
    %136 = arith.addf %135, %134 : vector<8x384xf32>
    %137 = arith.divf %135, %136 : vector<8x384xf32>
    %138 = vector.extract_strided_slice %137 {offsets = [0, 0], sizes = [8, 128], strides = [1, 1]} : vector<8x384xf32> to vector<8x128xf32>
    %139 = vector.extract_strided_slice %137 {offsets = [0, 128], sizes = [8, 128], strides = [1, 1]} : vector<8x384xf32> to vector<8x128xf32>
    %140 = vector.extract_strided_slice %137 {offsets = [0, 256], sizes = [8, 128], strides = [1, 1]} : vector<8x384xf32> to vector<8x128xf32>
    %141 = vector.extract_strided_slice %131 {offsets = [0, 384], sizes = [8, 128], strides = [1, 1]} : vector<8x512xf32> to vector<8x128xf32>
    %142 = math.tanh %141 : vector<8x128xf32>
    %143 = arith.mulf %139, %122 : vector<8x128xf32>
    %144 = arith.mulf %138, %142 : vector<8x128xf32>
    %145 = arith.addf %143, %144 : vector<8x128xf32>
    %146 = math.tanh %145 : vector<8x128xf32>
    %147 = arith.mulf %140, %146 : vector<8x128xf32>
    %c6_i32 = arith.constant 6 : i32
    %c8_i32_46 = arith.constant 8 : i32
    %148 = arith.muli %c6_i32, %c8_i32_46 : i32
    %149 = arith.index_cast %148 : i32 to index
    %c0_47 = arith.constant 0 : index
    %150 = vector.load %arg11[%149, %c0_47] : memref<64x512xf32, #tpu.memory_space<vmem>>, vector<8x512xf32>
    %151 = arith.truncf %147 : vector<8x128xf32> to vector<8x128xbf16>
    %c0_48 = arith.constant 0 : index
    %c0_49 = arith.constant 0 : index
    %152 = vector.load %arg4[%c0_48, %c0_49] : memref<128x512xbf16, #tpu.memory_space<vmem>>, vector<128x512xbf16>
    %cst_50 = arith.constant dense<0.000000e+00> : vector<8x512xf32>
    %153 = tpu.matmul %151, %152, %cst_50 {dimension_numbers = #tpu.dot_dimension_numbers<[1], [0], [0], [1], [0, 0, 1, 1], [], []>} : vector<8x128xbf16>, vector<128x512xbf16>, vector<8x512xf32> -> vector<8x512xf32>
    %154 = arith.addf %150, %153 : vector<8x512xf32>
    %155 = vector.extract_strided_slice %154 {offsets = [0, 0], sizes = [8, 384], strides = [1, 1]} : vector<8x512xf32> to vector<8x384xf32>
    %156 = arith.negf %155 : vector<8x384xf32>
    %157 = math.exp %156 : vector<8x384xf32>
    %cst_51 = arith.constant 1.000000e+00 : f32
    %158 = vector.broadcast %cst_51 : f32 to vector<8x384xf32>
    %159 = arith.addf %158, %157 : vector<8x384xf32>
    %160 = arith.divf %158, %159 : vector<8x384xf32>
    %161 = vector.extract_strided_slice %160 {offsets = [0, 0], sizes = [8, 128], strides = [1, 1]} : vector<8x384xf32> to vector<8x128xf32>
    %162 = vector.extract_strided_slice %160 {offsets = [0, 128], sizes = [8, 128], strides = [1, 1]} : vector<8x384xf32> to vector<8x128xf32>
    %163 = vector.extract_strided_slice %160 {offsets = [0, 256], sizes = [8, 128], strides = [1, 1]} : vector<8x384xf32> to vector<8x128xf32>
    %164 = vector.extract_strided_slice %154 {offsets = [0, 384], sizes = [8, 128], strides = [1, 1]} : vector<8x512xf32> to vector<8x128xf32>
    %165 = math.tanh %164 : vector<8x128xf32>
    %166 = arith.mulf %162, %145 : vector<8x128xf32>
    %167 = arith.mulf %161, %165 : vector<8x128xf32>
    %168 = arith.addf %166, %167 : vector<8x128xf32>
    %169 = math.tanh %168 : vector<8x128xf32>
    %170 = arith.mulf %163, %169 : vector<8x128xf32>
    %c7_i32 = arith.constant 7 : i32
    %c8_i32_52 = arith.constant 8 : i32
    %171 = arith.muli %c7_i32, %c8_i32_52 : i32
    %172 = arith.index_cast %171 : i32 to index
    %c0_53 = arith.constant 0 : index
    %173 = vector.load %arg11[%172, %c0_53] : memref<64x512xf32, #tpu.memory_space<vmem>>, vector<8x512xf32>
    %174 = arith.truncf %170 : vector<8x128xf32> to vector<8x128xbf16>
    %c0_54 = arith.constant 0 : index
    %c0_55 = arith.constant 0 : index
    %175 = vector.load %arg4[%c0_54, %c0_55] : memref<128x512xbf16, #tpu.memory_space<vmem>>, vector<128x512xbf16>
    %cst_56 = arith.constant dense<0.000000e+00> : vector<8x512xf32>
    %176 = tpu.matmul %174, %175, %cst_56 {dimension_numbers = #tpu.dot_dimension_numbers<[1], [0], [0], [1], [0, 0, 1, 1], [], []>} : vector<8x128xbf16>, vector<128x512xbf16>, vector<8x512xf32> -> vector<8x512xf32>
    %177 = arith.addf %173, %176 : vector<8x512xf32>
    %178 = vector.extract_strided_slice %177 {offsets = [0, 0], sizes = [8, 384], strides = [1, 1]} : vector<8x512xf32> to vector<8x384xf32>
    %179 = arith.negf %178 : vector<8x384xf32>
    %180 = math.exp %179 : vector<8x384xf32>
    %cst_57 = arith.constant 1.000000e+00 : f32
    %181 = vector.broadcast %cst_57 : f32 to vector<8x384xf32>
    %182 = arith.addf %181, %180 : vector<8x384xf32>
    %183 = arith.divf %181, %182 : vector<8x384xf32>
    %184 = vector.extract_strided_slice %183 {offsets = [0, 0], sizes = [8, 128], strides = [1, 1]} : vector<8x384xf32> to vector<8x128xf32>
    %185 = vector.extract_strided_slice %183 {offsets = [0, 128], sizes = [8, 128], strides = [1, 1]} : vector<8x384xf32> to vector<8x128xf32>
    %186 = vector.extract_strided_slice %183 {offsets = [0, 256], sizes = [8, 128], strides = [1, 1]} : vector<8x384xf32> to vector<8x128xf32>
    %187 = vector.extract_strided_slice %177 {offsets = [0, 384], sizes = [8, 128], strides = [1, 1]} : vector<8x512xf32> to vector<8x128xf32>
    %188 = math.tanh %187 : vector<8x128xf32>
    %189 = arith.mulf %185, %168 : vector<8x128xf32>
    %190 = arith.mulf %184, %188 : vector<8x128xf32>
    %191 = arith.addf %189, %190 : vector<8x128xf32>
    %192 = math.tanh %191 : vector<8x128xf32>
    %193 = arith.mulf %186, %192 : vector<8x128xf32>
    %c8_i32_58 = arith.constant 8 : i32
    %c0_59 = arith.constant 0 : index
    %c0_60 = arith.constant 0 : index
    %194 = vector.load %arg9[%c0_59, %c0_60] : memref<8x128xf32, #tpu.memory_space<vmem>>, vector<8x128xf32>
    tpu.vector_store %arg9[%c0_59, %c0_60], %193 {strides = array<i32>} : memref<8x128xf32, #tpu.memory_space<vmem>>, vector<8x128xf32>,
    %c0_61 = arith.constant 0 : index
    %c0_62 = arith.constant 0 : index
    %195 = vector.load %arg10[%c0_61, %c0_62] : memref<8x128xf32, #tpu.memory_space<vmem>>, vector<8x128xf32>
    tpu.vector_store %arg10[%c0_61, %c0_62], %191 {strides = array<i32>} : memref<8x128xf32, #tpu.memory_space<vmem>>, vector<8x128xf32>,
    %196 = arith.truncf %193 : vector<8x128xf32> to vector<8x128xbf16>
    %c0_63 = arith.constant 0 : index
    %c0_64 = arith.constant 0 : index
    %197 = vector.load %arg6[%c0_63, %c0_64] : memref<128x128xbf16, #tpu.memory_space<vmem>>, vector<128x128xbf16>
    %cst_65 = arith.constant dense<0.000000e+00> : vector<8x128xf32>
    %198 = tpu.matmul %196, %197, %cst_65 {dimension_numbers = #tpu.dot_dimension_numbers<[1], [0], [0], [1], [0, 0, 1, 1], [], []>} : vector<8x128xbf16>, vector<128x128xbf16>, vector<8x128xf32> -> vector<8x128xf32>
    %c0_66 = arith.constant 0 : index
    %c0_67 = arith.constant 0 : index
    %199 = vector.load %arg7[%c0_66, %c0_67] : memref<1x128xf32, #tpu.memory_space<vmem>>, vector<1x128xf32>
    %200 = vector.broadcast %199 : vector<1x128xf32> to vector<8x128xf32>
    %201 = arith.addf %198, %200 : vector<8x128xf32>
    %c0_68 = arith.constant 0 : index
    %c0_69 = arith.constant 0 : index
    %202 = vector.load %arg8[%c0_68, %c0_69] : memref<8x128xf32, #tpu.memory_space<vmem>>, vector<8x128xf32>
    tpu.vector_store %arg8[%c0_68, %c0_69], %201 {strides = array<i32>} : memref<8x128xf32, #tpu.memory_space<vmem>>, vector<8x128xf32>,
    return
  }
}

</mosaic_0001>

<bundles_post_ra>
// kernel: tpu_custom_call.1
= control target key start
LH: loop header
LB: loop body
LE: loop exit
PB: predicated region body
PF: predicated region fallthrough
CT: control target
= control target key end

     0   :  { %16 = vsyncpa [#allocation4], 0  ;;  %s3128_s0 = inlined_call_operand.hbm [shape: f32[64,128], index: 0, kind: input, shape index: {}]   ;;  %s3129_s1 = inlined_call_operand.hbm [shape: f32[8,128], index: 1, kind: input, shape index: {}]   ;;  %s3130_s2 = inlined_call_operand.hbm [shape: f32[8,128], index: 2, kind: input, shape index: {}]   ;;  %s3131_s3 = inlined_call_operand.hbm [shape: bf16[128,512], index: 3, kind: input, shape index: {}]   ;;  %s3132_s4 = inlined_call_operand.hbm [shape: bf16[128,512], index: 4, kind: input, shape index: {}]   ;;  %s3133_s5 = inlined_call_operand.vmem [shape: f32[1,512], index: 5, kind: input, shape index: {}]   ;;  %s3134_s6 = inlined_call_operand.hbm [shape: bf16[128,128], index: 6, kind: input, shape index: {}]   ;;  %s3135_s7 = inlined_call_operand.vmem [shape: f32[1,128], index: 7, kind: input, shape index: {}]   ;;  %s3136_s8 = inlined_call_operand.hbm [shape: f32[8,128], index: 8, kind: output, shape index: {0}]   ;;  %s3137_s9 = inlined_call_operand.hbm [shape: f32[8,128], index: 9, kind: output, shape index: {1}]   ;;  %s3138_s10 = inlined_call_operand.hbm [shape: f32[8,128], index: 10, kind: output, shape index: {2}]  }
   0x1   :  { %17 = vsyncpa [#allocation7], 0 }
   0x2   :  { %18 = vsyncpa [#allocation10], 0 }
   0x3   :  { %19 = vsyncpa [#allocation13], 0 }
   0x4   :  { %20 = vsyncpa [#allocation5], 0 }
   0x5   :  { %21 = vsyncpa [#allocation16], 0  ;;  %s2409_s13 = smov [#allocation6]   ;;  %s2410_s15 = smov [#allocation9]  }
   0x6   :  { %s40_s14 = sshll.u32 %s2409_s13, 4  ;;  %s59_s16 = sshll.u32 %s2410_s15, 4  ;;  %s41_s14 = int_to_ptr.vmem [resolvable:$true] %s40_s14  ;;  %s2482_s16 = int_to_ptr.vmem [resolvable:$true] %s59_s16 }
   0x7   :  { %s2199_s19 = scalar_lea.hbm %s3129_s1, 128 }
   0x8   :  { %p2200_p0 = scmp.ne.s32.totalorder %s3129_s1, %s2199_s19  ;;  %p2203_p1 = scmp.lt.u32.totalorder %s2199_s19, %s3129_s1 }
   0xa   :  { %p2205_p2 = pnand %p2203_p1, %p2200_p0 }
   0xc   :  { %2208 = shalt.err (!%p2205_p2)
}
   0xd   :  { %s2209_s24 = scalar_lea.vmem %s41_s14, 128  ;;  %p2214_p4 = scmp.lt.s32.totalorder %s41_s14, %s41_s14 }
   0xe   :  { %p2210_p3 = scmp.ne.s32.totalorder %s41_s14, %s2209_s24  ;;  %p2215_p5 = scmp.lt.s32.totalorder %s2209_s24, %s2209_s24 }
  0x10   :  { %p2216_p6 = por %p2215_p5, %p2214_p4 }
  0x12   :  { %p2217_p7 = pnand %p2216_p6, %p2210_p3 }
  0x14   :  { %2220 = shalt.err (!%p2217_p7)
}
  0x15   :  { %43 = dma.hbm_to_vmem [thread:$0]  %s3129_s1, 128, %s41_s14, [#allocation7]  }
  0x16   :  { %s2221_s29 = scalar_lea.hbm %s3131_s3, 4096 }
  0x17   :  { %p2222_p8 = scmp.ne.s32.totalorder %s3131_s3, %s2221_s29  ;;  %p2225_p9 = scmp.lt.u32.totalorder %s2221_s29, %s3131_s3 }
  0x19   :  { %p2227_p10 = pnand %p2225_p9, %p2222_p8 }
  0x1b   :  { %2230 = shalt.err (!%p2227_p10)
}
  0x1c   :  { %s2231_s15 = scalar_lea.vmem %s2482_s16, 4096  ;;  %p2236_p12 = scmp.lt.s32.totalorder %s2482_s16, %s2482_s16 }
  0x1d   :  { %p2232_p11 = scmp.ne.s32.totalorder %s2482_s16, %s2231_s15  ;;  %p2237_p13 = scmp.lt.s32.totalorder %s2231_s15, %s2231_s15 }
  0x1f   :  { %p2238_p0 = por %p2237_p13, %p2236_p12 }
  0x21   :  { %p2239_p1 = pnand %p2238_p0, %p2232_p11 }
  0x23   :  { %2242 = shalt.err (!%p2239_p1)
}
  0x24   :  { %s2411_s1 = smov 256   ;;  %s2412_s14 = smov 16  }
  0x25   :  { %65 = dma.hbm_to_vmem [thread:$0]  %s3131_s3, 4096, %s2482_s16, [#allocation10], %s2411_s1, %s2411_s1, %s2412_s14  }
  0x26   :  { %s2413_s19 = smov [#allocation3]   ;;  %s2243_s23 = scalar_lea.hbm %s3128_s0, 1024 }
  0x27   :  { %s27_s20 = sshll.u32 %s2413_s19, 4  ;;  %p2244_p2 = scmp.ne.s32.totalorder %s3128_s0, %s2243_s23  ;;  %s28_s20 = int_to_ptr.vmem [resolvable:$true] %s27_s20 }
  0x28   :  { %p2247_p3 = scmp.lt.u32.totalorder %s2243_s23, %s3128_s0 }
  0x2a   :  { %p2249_p4 = pnand %p2247_p3, %p2244_p2 }
  0x2c   :  { %2252 = shalt.err (!%p2249_p4)
}
  0x2d   :  { %s2253_s28 = scalar_lea.vmem %s28_s20, 1024  ;;  %p2258_p6 = scmp.lt.s32.totalorder %s28_s20, %s28_s20 }
  0x2e   :  { %p2254_p5 = scmp.ne.s32.totalorder %s28_s20, %s2253_s28  ;;  %p2259_p7 = scmp.lt.s32.totalorder %s2253_s28, %s2253_s28 }
  0x30   :  { %p2260_p8 = por %p2259_p7, %p2258_p6 }
  0x32   :  { %p2261_p9 = pnand %p2260_p8, %p2254_p5 }
  0x34   :  { %2264 = shalt.err (!%p2261_p9)
}
  0x35   :  { %s2414_s3 = smov 128   ;;  %s2415_s16 = smov 8  }
  0x36   :  { %33 = dma.hbm_to_vmem [thread:$0]  %s3128_s0, 1024, %s28_s20, [#allocation4], %s2414_s3, %s2414_s3, %s2415_s16  }
  0x37   :  { %s2416_s11 = smov [#allocation8]   ;;  %s2417_s13 = smov [#allocation11]  }
  0x38   :  { %s50_s12 = sshll.u32 %s2416_s11, 4  ;;  %s71_s15 = sshll.u32 %s2417_s13, 4  ;;  %s51_s12 = int_to_ptr.vmem [resolvable:$true] %s50_s12  ;;  %s72_s15 = int_to_ptr.vmem [resolvable:$true] %s71_s15 }
  0x39   :  { %s2265_s19 = scalar_lea.hbm %s3130_s2, 128 }
  0x3a   :  { %p2266_p10 = scmp.ne.s32.totalorder %s3130_s2, %s2265_s19  ;;  %p2269_p11 = scmp.lt.u32.totalorder %s2265_s19, %s3130_s2 }
  0x3c   :  { %p2271_p12 = pnand %p2269_p11, %p2266_p10 }
  0x3e   :  { %2274 = shalt.err (!%p2271_p12)
}
  0x3f   :  { %s2275_s0 = scalar_lea.vmem %s51_s12, 128  ;;  %p2280_p0 = scmp.lt.s32.totalorder %s51_s12, %s51_s12 }
  0x40   :  { %p2276_p13 = scmp.ne.s32.totalorder %s51_s12, %s2275_s0  ;;  %p2281_p1 = scmp.lt.s32.totalorder %s2275_s0, %s2275_s0 }
  0x42   :  { %p2282_p2 = por %p2281_p1, %p2280_p0 }
  0x44   :  { %p2283_p3 = pnand %p2282_p2, %p2276_p13 }
  0x46   :  { %2286 = shalt.err (!%p2283_p3)
}
  0x47   :  { %53 = dma.hbm_to_vmem [thread:$0]  %s3130_s2, 128, %s51_s12, [#allocation7]  }
  0x48   :  { %s2287_s28 = scalar_lea.hbm %s3132_s4, 4096 }
  0x49   :  { %p2288_p4 = scmp.ne.s32.totalorder %s3132_s4, %s2287_s28  ;;  %p2291_p5 = scmp.lt.u32.totalorder %s2287_s28, %s3132_s4 }
  0x4b   :  { %p2293_p6 = pnand %p2291_p5, %p2288_p4 }
  0x4d   :  { %2296 = shalt.err (!%p2293_p6)
}
  0x4e   :  { %s2297_s11 = scalar_lea.vmem %s72_s15, 4096  ;;  %p2302_p8 = scmp.lt.s32.totalorder %s72_s15, %s72_s15 }
  0x4f   :  { %p2298_p7 = scmp.ne.s32.totalorder %s72_s15, %s2297_s11  ;;  %p2303_p9 = scmp.lt.s32.totalorder %s2297_s11, %s2297_s11 }
  0x51   :  { %p2304_p10 = por %p2303_p9, %p2302_p8 }
  0x53   :  { %p2305_p11 = pnand %p2304_p10, %p2298_p7 }
  0x55   :  { %2308 = shalt.err (!%p2305_p11)
}
  0x56   :  { %77 = dma.hbm_to_vmem [thread:$0]  %s3132_s4, 4096, %s72_s15, [#allocation10], %s2411_s1, %s2411_s1, %s2412_s14  }
  0x57   :  { %s2418_s13 = smov [#allocation12]   ;;  %s2309_s21 = scalar_lea.hbm %s3134_s6, 1024 }
  0x58   :  { %s85_s17 = sshll.u32 %s2418_s13, 4  ;;  %p2310_p12 = scmp.ne.s32.totalorder %s3134_s6, %s2309_s21  ;;  %s86_s17 = int_to_ptr.vmem [resolvable:$true] %s85_s17 }
  0x59   :  { %p2313_p13 = scmp.lt.u32.totalorder %s2309_s21, %s3134_s6 }
  0x5b   :  { %p2315_p0 = pnand %p2313_p13, %p2310_p12 }
  0x5d   :  { %2318 = shalt.err (!%p2315_p0)
}
  0x5e   :  { %s2319_s20 = scalar_lea.vmem %s86_s17, 1024  ;;  %p2324_p2 = scmp.lt.s32.totalorder %s86_s17, %s86_s17 }
  0x5f   :  { %p2320_p1 = scmp.ne.s32.totalorder %s86_s17, %s2319_s20  ;;  %p2325_p3 = scmp.lt.s32.totalorder %s2319_s20, %s2319_s20 }
  0x61   :  { %p2326_p4 = por %p2325_p3, %p2324_p2 }
  0x63   :  { %p2327_p5 = pnand %p2326_p4, %p2320_p1 }
  0x65   :  { %2330 = shalt.err (!%p2327_p5)
}
  0x66   :  { %s2419_s4 = smov 64   ;;  %s2420_s1 = smov 4  }
  0x67   :  { %91 = dma.hbm_to_vmem [thread:$0]  %s3134_s6, 1024, %s86_s17, [#allocation13], %s2419_s4, %s2419_s4, %s2420_s1  }
  0x68   :  { %2397 = dma.done.wait [#allocation4], 1024  }
  0x69   :  { %2398 = vsyncadd [#allocation4], 4294966272 }
  0x6a   :  { %2399 = dma.done.wait [#allocation7], 256  }
  0x6b   :  { %2400 = vsyncadd [#allocation7], 4294967040 }
  0x6c   :  { %2401 = dma.done.wait [#allocation10], 8192  }
  0x6d   :  { %2402 = vsyncadd [#allocation10], 4294959104 }
  0x6e   :  { %2403 = dma.done.wait [#allocation13], 1024  }
  0x6f   :  { %2404 = vsyncadd [#allocation13], 4294966272  ;;  %v3139_v0 = vmov 0   ;;  %v1935_v1 = vld [vmem:[#allocation9 + $0x4] ss:$16 sps:$4 sm:$0xff]   ;;  %v114_v34 = vld [vmem:[#allocation3 + $0x8] sm:$0xff] }
  0x70   :  { %371 = vmatprep.mubr.bf16.mxu0 %v3139_v0  ;;  %444 = vmatprep.mubr.bf16.mxu1 %v3139_v0  ;;  %v1937_v2 = vld [vmem:[#allocation9 + $0xc] ss:$16 sps:$4 sm:$0xff]   ;;  %v1939_v3 = vld [vmem:[#allocation9] ss:$16 sps:$4 sm:$0xff]   ;;  %v1940_v4 = vld [vmem:[#allocation9 + $0x8] ss:$16 sps:$4 sm:$0xff]  }
  0x71   :  { %339 = vmatprep.subr.bf16.mxu0 %v1935_v1  ;;  %412 = vmatprep.subr.bf16.mxu1 %v1937_v2  ;;  %v1941_v5 = vld [vmem:[#allocation9 + $0x24] ss:$16 sps:$4 sm:$0xff]   ;;  %v1943_v6 = vld [vmem:[#allocation9 + $0x2c] ss:$16 sps:$4 sm:$0xff]   ;;  %v1945_v7 = vld [vmem:[#allocation9 + $0x20] ss:$16 sps:$4 sm:$0xff]  }
  0x72   :  { %340 = vmatpush1.bf16.msra.mxu0 %v1939_v3  ;;  %413 = vmatpush1.bf16.msra.mxu1 %v1940_v4  ;;  %v1946_v8 = vld [vmem:[#allocation9 + $0x28] ss:$16 sps:$4 sm:$0xff]   ;;  %v1947_v9 = vld [vmem:[#allocation9 + $0x44] ss:$16 sps:$4 sm:$0xff]   ;;  %v1949_v10 = vld [vmem:[#allocation9 + $0x4c] ss:$16 sps:$4 sm:$0xff]  }
  0x73   :  { %341 = vmatprep.subr.bf16.mxu0 %v1941_v5  ;;  %414 = vmatprep.subr.bf16.mxu1 %v1943_v6  ;;  %v1951_v11 = vld [vmem:[#allocation9 + $0x40] ss:$16 sps:$4 sm:$0xff]   ;;  %v1952_v12 = vld [vmem:[#allocation9 + $0x48] ss:$16 sps:$4 sm:$0xff]   ;;  %v1953_v13 = vld [vmem:[#allocation9 + $0x64] ss:$16 sps:$4 sm:$0xff]  }
  0x74   :  { %v1955_v14 = vld [vmem:[#allocation9 + $0x6c] ss:$16 sps:$4 sm:$0xff]   ;;  %v1957_v15 = vld [vmem:[#allocation9 + $0x60] ss:$16 sps:$4 sm:$0xff]   ;;  %v1958_v16 = vld [vmem:[#allocation9 + $0x68] ss:$16 sps:$4 sm:$0xff]  }
  0x75   :  { %v1959_v17 = vld [vmem:[#allocation9 + $0x84] ss:$16 sps:$4 sm:$0xff]   ;;  %v1961_v18 = vld [vmem:[#allocation9 + $0x8c] ss:$16 sps:$4 sm:$0xff]   ;;  %v1963_v19 = vld [vmem:[#allocation9 + $0x80] ss:$16 sps:$4 sm:$0xff]  }
  0x76   :  { %342 = vmatpush1.bf16.msra.mxu0 %v1945_v7  ;;  %415 = vmatpush1.bf16.msra.mxu1 %v1946_v8  ;;  %v1964_v20 = vld [vmem:[#allocation9 + $0x88] ss:$16 sps:$4 sm:$0xff]   ;;  %v1965_v21 = vld [vmem:[#allocation9 + $0xa4] ss:$16 sps:$4 sm:$0xff]   ;;  %v1967_v22 = vld [vmem:[#allocation9 + $0xac] ss:$16 sps:$4 sm:$0xff]  }
  0x77   :  { %343 = vmatprep.subr.bf16.mxu0 %v1947_v9  ;;  %416 = vmatprep.subr.bf16.mxu1 %v1949_v10  ;;  %v1969_v23 = vld [vmem:[#allocation9 + $0xa0] ss:$16 sps:$4 sm:$0xff]   ;;  %v1970_v24 = vld [vmem:[#allocation9 + $0xa8] ss:$16 sps:$4 sm:$0xff]   ;;  %v1971_v25 = vld [vmem:[#allocation9 + $0xc4] ss:$16 sps:$4 sm:$0xff]  }
  0x78   :  { %v1973_v26 = vld [vmem:[#allocation9 + $0xcc] ss:$16 sps:$4 sm:$0xff]   ;;  %v1975_v27 = vld [vmem:[#allocation9 + $0xc0] ss:$16 sps:$4 sm:$0xff]   ;;  %v1976_v28 = vld [vmem:[#allocation9 + $0xc8] ss:$16 sps:$4 sm:$0xff]  }
  0x79   :  { %v1977_v29 = vld [vmem:[#allocation9 + $0xe4] ss:$16 sps:$4 sm:$0xff]   ;;  %v1979_v30 = vld [vmem:[#allocation9 + $0xec] ss:$16 sps:$4 sm:$0xff]   ;;  %v1981_v31 = vld [vmem:[#allocation9 + $0xe0] ss:$16 sps:$4 sm:$0xff]  }
  0x7a   :  { %344 = vmatpush1.bf16.msra.mxu0 %v1951_v11  ;;  %417 = vmatpush1.bf16.msra.mxu1 %v1952_v12  ;;  %v1982_v32 = vld [vmem:[#allocation9 + $0xe8] ss:$16 sps:$4 sm:$0xff]   ;;  %v113_v33 = vld [vmem:[#allocation3] sm:$0xff]  ;;  %v2571_v36 = vld [vmem:[#allocation11 + $0xc] ss:$16 sps:$4 sm:$0xff]   ;;  %vm2423_vm0 = vmmov 0  }
  0x7b   :  { %345 = vmatprep.subr.bf16.mxu0 %v1953_v13  ;;  %418 = vmatprep.subr.bf16.mxu1 %v1955_v14  ;;  %v2569_v35 = vld [vmem:[#allocation11 + $0x4] ss:$16 sps:$4 sm:$0xff]   ;;  %v121_v37 = vpack.c.bf16 %v114_v34, %v113_v33  ;;  %v2573_v38 = vld [vmem:[#allocation11] ss:$16 sps:$4 sm:$0xff]   ;;  %v2575_v39 = vld [vmem:[#allocation11 + $0x8] ss:$16 sps:$4 sm:$0xff]  }
  0x7c   :  { %v2579_v40 = vld [vmem:[#allocation11 + $0x24] ss:$16 sps:$4 sm:$0xff]   ;;  %v2581_v41 = vld [vmem:[#allocation11 + $0x2c] ss:$16 sps:$4 sm:$0xff]   ;;  %v2583_v42 = vld [vmem:[#allocation11 + $0x20] ss:$16 sps:$4 sm:$0xff]  }
  0x7d   :  { %v2585_v43 = vld [vmem:[#allocation11 + $0x28] ss:$16 sps:$4 sm:$0xff]   ;;  %v115_v44 = vld [vmem:[#allocation3 + $0x10] sm:$0xff]  ;;  %v2593_v47 = vld [vmem:[#allocation11 + $0x4c] ss:$16 sps:$4 sm:$0xff]  }
  0x7e   :  { %346 = vmatpush1.bf16.msra.mxu0 %v1957_v15  ;;  %419 = vmatpush1.bf16.msra.mxu1 %v1958_v16  ;;  %v116_v45 = vld [vmem:[#allocation3 + $0x18] sm:$0xff]  ;;  %v2589_v46 = vld [vmem:[#allocation11 + $0x44] ss:$16 sps:$4 sm:$0xff]   ;;  %v2597_v49 = vld [vmem:[#allocation11 + $0x40] ss:$16 sps:$4 sm:$0xff]   ;;  %v159_v16 = vlaneseq }
  0x7f   :  { %347 = vmatprep.subr.bf16.mxu0 %v1959_v17  ;;  %420 = vmatprep.subr.bf16.mxu1 %v1961_v18  ;;  %v122_v48 = vpack.c.bf16 %v116_v45, %v115_v44  ;;  %v2599_v50 = vld [vmem:[#allocation11 + $0x48] ss:$16 sps:$4 sm:$0xff]   ;;  %v2603_v51 = vld [vmem:[#allocation11 + $0x64] ss:$16 sps:$4 sm:$0xff]   ;;  %v2607_v52 = vld [vmem:[#allocation11 + $0x6c] ss:$16 sps:$4 sm:$0xff]  }
  0x80   :  { %v2609_v53 = vld [vmem:[#allocation11 + $0x60] ss:$16 sps:$4 sm:$0xff]   ;;  %v2611_v54 = vld [vmem:[#allocation11 + $0x68] ss:$16 sps:$4 sm:$0xff]   ;;  %v2617_v57 = vld [vmem:[#allocation11 + $0x84] ss:$16 sps:$4 sm:$0xff]  }
  0x81   :  { %v117_v55 = vld [vmem:[#allocation3 + $0x20] sm:$0xff]  ;;  %v118_v56 = vld [vmem:[#allocation3 + $0x28] sm:$0xff]  ;;  %v119_v3 = vld [vmem:[#allocation3 + $0x30] sm:$0xff]  ;;  %v160_v17 = vshrl.u32 %v159_v16, 7 }
  0x82   :  { %348 = vmatpush1.bf16.msra.mxu0 %v1963_v19  ;;  %421 = vmatpush1.bf16.msra.mxu1 %v1964_v20  ;;  %v2619_v58 = vld [vmem:[#allocation11 + $0x8c] ss:$16 sps:$4 sm:$0xff]   ;;  %v2623_v59 = vld [vmem:[#allocation11 + $0x80] ss:$16 sps:$4 sm:$0xff]   ;;  %v2625_v60 = vld [vmem:[#allocation11 + $0x88] ss:$16 sps:$4 sm:$0xff]   ;;  %v123_v61 = vpack.c.bf16 %v118_v56, %v117_v55 }
  0x83   :  { %349 = vmatprep.subr.bf16.mxu0 %v1965_v21  ;;  %422 = vmatprep.subr.bf16.mxu1 %v1967_v22  ;;  %v2627_v62 = vld [vmem:[#allocation11 + $0xa4] ss:$16 sps:$4 sm:$0xff]   ;;  %v2629_v63 = vld [vmem:[#allocation11 + $0xac] ss:$16 sps:$4 sm:$0xff]   ;;  %v2635_v1 = vld [vmem:[#allocation11 + $0xa0] ss:$16 sps:$4 sm:$0xff]  }
  0x84   :  { %v2639_v2 = vld [vmem:[#allocation11 + $0xa8] ss:$16 sps:$4 sm:$0xff]   ;;  %v2643_v5 = vld [vmem:[#allocation11 + $0xc4] ss:$16 sps:$4 sm:$0xff]   ;;  %v2645_v6 = vld [vmem:[#allocation11 + $0xcc] ss:$16 sps:$4 sm:$0xff]  }
  0x85   :  { %v120_v4 = vld [vmem:[#allocation3 + $0x38] sm:$0xff]  ;;  %v2651_v8 = vld [vmem:[#allocation11 + $0xc0] ss:$16 sps:$4 sm:$0xff]   ;;  %v2657_v10 = vld [vmem:[#allocation11 + $0xe4] ss:$16 sps:$4 sm:$0xff]   ;;  %v169_v18 = vsub.s32 2, %v160_v17 }
  0x86   :  { %350 = vmatpush1.bf16.msra.mxu0 %v1969_v23  ;;  %423 = vmatpush1.bf16.msra.mxu1 %v1970_v24  ;;  %v124_v7 = vpack.c.bf16 %v120_v4, %v119_v3  ;;  %v2653_v9 = vld [vmem:[#allocation11 + $0xc8] ss:$16 sps:$4 sm:$0xff]   ;;  %v2659_v11 = vld [vmem:[#allocation11 + $0xec] ss:$16 sps:$4 sm:$0xff]   ;;  %v2663_v12 = vld [vmem:[#allocation11 + $0xe0] ss:$16 sps:$4 sm:$0xff]  }
  0x87   :  { %351 = vmatprep.subr.bf16.mxu0 %v1971_v25  ;;  %424 = vmatprep.subr.bf16.mxu1 %v1973_v26  ;;  %v2665_v13 = vld [vmem:[#allocation11 + $0xe8] ss:$16 sps:$4 sm:$0xff]   ;;  %v517_v14 = vld [vmem:[#allocation6] sm:$0xff]  ;;  %v173_v19 = vsub.s32 3, %v160_v17  ;;  %v161_v20 = vsub.s32 0, %v160_v17  ;;  %v165_v22 = vsub.s32 1, %v160_v17 }
  0x88   :  { %v523_v15 = vpack.c.bf16 %v517_v14, %v517_v14  ;;  %v157_v21 = vld [vmem:[%s3133_s5] sm:$0xf]  ;;  %s2424_s5 = smov [#allocation15]  }
  0x89   :  { %v2712_v23 = vrot.slane %v157_v21, %v169_v18  ;;  %v2718_v26 = vrot.slane %v157_v21, %v173_v19  ;;  %s1762_s26 = sshll.u32 %s2424_s5, 4  ;;  %s1763_s26 = int_to_ptr.vmem [resolvable:$true] %s1762_s26 }
  0x8a   :  { %352 = vmatpush1.bf16.msra.mxu0 %v1975_v27  ;;  %425 = vmatpush1.bf16.msra.mxu1 %v1976_v28  ;;  %v162_v27 = vrot.slane %v157_v21, %v161_v20  ;;  %s2331_s27 = scalar_lea.vmem %s1763_s26, 128  ;;  %p2336_p7 = scmp.lt.s32.totalorder %s1763_s26, %s1763_s26 }
  0x8b   :  { %353 = vmatprep.subr.bf16.mxu0 %v1977_v29  ;;  %426 = vmatprep.subr.bf16.mxu1 %v1979_v30  ;;  %v166_v30 = vrot.slane %v157_v21, %v165_v22  ;;  %p2332_p6 = scmp.ne.s32.totalorder %s1763_s26, %s2331_s27  ;;  %p2337_p8 = scmp.lt.s32.totalorder %s2331_s27, %s2331_s27 }
  0x8d   :  { %p2338_p9 = por %p2337_p8, %p2336_p7 }
  0x8e   :  { %354 = vmatpush1.bf16.msra.mxu0 %v1981_v31  ;;  %427 = vmatpush1.bf16.msra.mxu1 %v1982_v32 }
  0x8f   :  { %716 = vmatprep.subr.bf16.mxu0 %v2569_v35  ;;  %757 = vmatprep.subr.bf16.mxu1 %v2571_v36  ;;  %p2339_p10 = pnand %p2338_p9, %p2332_p6 }
  0x91   :  { %372 = vmatmul.mubr.bf16.vlgmr.msra.gmra.mrb[0].mxu0 %v121_v37  ;;  %445 = vmatmul.mubr.bf16.vlgmr.msra.gmra.mrb[0].mxu1 %v121_v37 }
  0x92   :  { %717 = vmatpush1.bf16.msra.mxu0 %v2573_v38  ;;  %758 = vmatpush1.bf16.msra.mxu1 %v2575_v39 }
  0x93   :  { %718 = vmatprep.subr.bf16.mxu0 %v2579_v40  ;;  %759 = vmatprep.subr.bf16.mxu1 %v2581_v41 }
  0x94   :  { %381 = vmatprep.mubr.bf16.mxu0 %v3139_v0  ;;  %454 = vmatprep.mubr.bf16.mxu1 %v3139_v0 }
  0x96   :  { %719 = vmatpush1.bf16.msra.mxu0 %v2583_v42  ;;  %760 = vmatpush1.bf16.msra.mxu1 %v2585_v43 }
  0x97   :  { %720 = vmatprep.subr.bf16.mxu0 %v2589_v46  ;;  %761 = vmatprep.subr.bf16.mxu1 %v2593_v47 }
  0x99   :  { %382 = vmatmul.mubr.bf16.gmra.mrb[4].mxu0 %v122_v48  ;;  %455 = vmatmul.mubr.bf16.gmra.mrb[4].mxu1 %v122_v48 }
  0x9a   :  { %721 = vmatpush1.bf16.msra.mxu0 %v2597_v49  ;;  %762 = vmatpush1.bf16.msra.mxu1 %v2599_v50 }
  0x9b   :  { %722 = vmatprep.subr.bf16.mxu0 %v2603_v51  ;;  %763 = vmatprep.subr.bf16.mxu1 %v2607_v52 }
  0x9c   :  { %391 = vmatprep.mubr.bf16.mxu0 %v3139_v0  ;;  %464 = vmatprep.mubr.bf16.mxu1 %v3139_v0 }
  0x9e   :  { %723 = vmatpush1.bf16.msra.mxu0 %v2609_v53  ;;  %764 = vmatpush1.bf16.msra.mxu1 %v2611_v54 }
  0x9f   :  { %724 = vmatprep.subr.bf16.mxu0 %v2617_v57  ;;  %765 = vmatprep.subr.bf16.mxu1 %v2619_v58 }
  0xa1   :  { %392 = vmatmul.mubr.bf16.gmra.mrb[8].mxu0 %v123_v61  ;;  %465 = vmatmul.mubr.bf16.gmra.mrb[8].mxu1 %v123_v61 }
  0xa2   :  { %725 = vmatpush1.bf16.msra.mxu0 %v2623_v59  ;;  %766 = vmatpush1.bf16.msra.mxu1 %v2625_v60 }
  0xa3   :  { %726 = vmatprep.subr.bf16.mxu0 %v2627_v62  ;;  %767 = vmatprep.subr.bf16.mxu1 %v2629_v63 }
  0xa4   :  { %401 = vmatprep.mubr.bf16.mxu0 %v3139_v0  ;;  %474 = vmatprep.mubr.bf16.mxu1 %v3139_v0 }
  0xa6   :  { %727 = vmatpush1.bf16.msra.mxu0 %v2635_v1  ;;  %768 = vmatpush1.bf16.msra.mxu1 %v2639_v2 }
  0xa7   :  { %728 = vmatprep.subr.bf16.mxu0 %v2643_v5  ;;  %769 = vmatprep.subr.bf16.mxu1 %v2645_v6 }
  0xa9   :  { %402 = vmatmul.mubr.bf16.gmra.mrb[12].mxu0 %v124_v7  ;;  %475 = vmatmul.mubr.bf16.gmra.mrb[12].mxu1 %v124_v7 }
  0xaa   :  { %729 = vmatpush1.bf16.msra.mxu0 %v2651_v8  ;;  %770 = vmatpush1.bf16.msra.mxu1 %v2653_v9 }
  0xab   :  { %730 = vmatprep.subr.bf16.mxu0 %v2657_v10  ;;  %771 = vmatprep.subr.bf16.mxu1 %v2659_v11 }
  0xac   :  { %748 = vmatprep.mubr.bf16.mxu0 %v3139_v0  ;;  %789 = vmatprep.mubr.bf16.mxu1 %v3139_v0 }
  0xae   :  { %731 = vmatpush1.bf16.msra.mxu0 %v2663_v12  ;;  %772 = vmatpush1.bf16.msra.mxu1 %v2665_v13 }
  0xaf   :  { %831 = vmatprep.subr.bf16.mxu0 %v2569_v35  ;;  %872 = vmatprep.subr.bf16.mxu1 %v2571_v36 }
  0xb1   :  { %749 = vmatmul.mubr.bf16.vlgmr.msra.gmra.mrb[16].mxu0 %v523_v15  ;;  %790 = vmatmul.mubr.bf16.vlgmr.msra.gmra.mrb[16].mxu1 %v523_v15 }
  0xb2   :  { %832 = vmatpush1.bf16.msra.mxu0 %v2573_v38  ;;  %873 = vmatpush1.bf16.msra.mxu1 %v2575_v39 }
  0xb3   :  { %833 = vmatprep.subr.bf16.mxu0 %v2579_v40  ;;  %874 = vmatprep.subr.bf16.mxu1 %v2581_v41 }
  0xb4   :  { %863 = vmatprep.mubr.bf16.mxu0 %v3139_v0  ;;  %904 = vmatprep.mubr.bf16.mxu1 %v3139_v0 }
  0xb6   :  { %834 = vmatpush1.bf16.msra.mxu0 %v2583_v42  ;;  %875 = vmatpush1.bf16.msra.mxu1 %v2585_v43 }
  0xb7   :  { %835 = vmatprep.subr.bf16.mxu0 %v2589_v46  ;;  %876 = vmatprep.subr.bf16.mxu1 %v2593_v47 }
  0xba   :  { %836 = vmatpush1.bf16.msra.mxu0 %v2597_v49  ;;  %877 = vmatpush1.bf16.msra.mxu1 %v2599_v50 }
  0xbb   :  { %837 = vmatprep.subr.bf16.mxu0 %v2603_v51  ;;  %878 = vmatprep.subr.bf16.mxu1 %v2607_v52 }
  0xbe   :  { %838 = vmatpush1.bf16.msra.mxu0 %v2609_v53  ;;  %879 = vmatpush1.bf16.msra.mxu1 %v2611_v54 }
  0xbf   :  { %839 = vmatprep.subr.bf16.mxu0 %v2617_v57  ;;  %880 = vmatprep.subr.bf16.mxu1 %v2619_v58 }
  0xc2   :  { %840 = vmatpush1.bf16.msra.mxu0 %v2623_v59  ;;  %881 = vmatpush1.bf16.msra.mxu1 %v2625_v60 }
  0xc3   :  { %841 = vmatprep.subr.bf16.mxu0 %v2627_v62  ;;  %882 = vmatprep.subr.bf16.mxu1 %v2629_v63 }
  0xc6   :  { %842 = vmatpush1.bf16.msra.mxu0 %v2635_v1  ;;  %883 = vmatpush1.bf16.msra.mxu1 %v2639_v2 }
  0xc7   :  { %843 = vmatprep.subr.bf16.mxu0 %v2643_v5  ;;  %884 = vmatprep.subr.bf16.mxu1 %v2645_v6 }
  0xca   :  { %844 = vmatpush1.bf16.msra.mxu0 %v2651_v8  ;;  %885 = vmatpush1.bf16.msra.mxu1 %v2653_v9 }
  0xcb   :  { %845 = vmatprep.subr.bf16.mxu0 %v2657_v10  ;;  %886 = vmatprep.subr.bf16.mxu1 %v2659_v11 }
  0xce   :  { %846 = vmatpush1.bf16.msra.mxu0 %v2663_v12  ;;  %887 = vmatpush1.bf16.msra.mxu1 %v2665_v13 }
  0xcf   :  { %946 = vmatprep.subr.bf16.mxu0 %v2569_v35  ;;  %987 = vmatprep.subr.bf16.mxu1 %v2571_v36 }
 0x164   :  { %v2714_v24 = vpop.f32.mrb[0].mxu0  ;;  %v2716_v25 = vpop.f32.mrb[0].mxu1 }
 0x165   :  { %v375_v28 = vpop.f32.mrb[1].mxu0  ;;  %v448_v29 = vpop.f32.mrb[1].mxu1 }
 0x166   :  { %v377_v31 = vpop.f32.mrb[2].mxu0  ;;  %v450_v32 = vpop.f32.mrb[2].mxu1 }
 0x167   :  { %v2720_v33 = vadd.f32 %v377_v31, %v162_v27  ;;  %v379_v34 = vpop.f32.mrb[3].mxu0  ;;  %v2723_v37 = vadd.f32 %v450_v32, %v2712_v23  ;;  %v452_v44 = vpop.f32.mrb[3].mxu1 }
 0x168   :  { %v2725_v45 = vadd.f32 %v379_v34, %v166_v30  ;;  %v2728_v48 = vadd.f32 %v452_v44, %v2718_v26 }
 0x16c   :  { %v383_v55 = vpop.f32.mrb[4].mxu0  ;;  %v456_v56 = vpop.f32.mrb[4].mxu1 }
 0x16d   :  { %v2730_v61 = vadd.f32 %v383_v55, %v162_v27  ;;  %v385_v3 = vpop.f32.mrb[5].mxu0  ;;  %v2733_v4 = vadd.f32 %v456_v56, %v2712_v23  ;;  %v458_v7 = vpop.f32.mrb[5].mxu1 }
 0x16e   :  { %v2735_v14 = vadd.f32 %v385_v3, %v166_v30  ;;  %v387_v15 = vpop.f32.mrb[6].mxu0  ;;  %v2738_v16 = vadd.f32 %v458_v7, %v2718_v26  ;;  %v460_v17 = vpop.f32.mrb[6].mxu1 }
 0x16f   :  { %v2740_v18 = vadd.f32 %v387_v15, %v162_v27  ;;  %v389_v19 = vpop.f32.mrb[7].mxu0  ;;  %v2743_v20 = vadd.f32 %v460_v17, %v2712_v23  ;;  %v462_v21 = vpop.f32.mrb[7].mxu1 }
 0x170   :  { %3141 = vst [vmem:[#allocation24_spill] sm:$0xff] %v2738_v16  ;;  %v2745_v22 = vadd.f32 %v389_v19, %v166_v30  ;;  %v2748_v31 = vadd.f32 %v462_v21, %v2718_v26 }
 0x171   :  { %3142 = vst [vmem:[#allocation25_spill] sm:$0xff] %v2740_v18  ;;  %3143 = vst [vmem:[#allocation26_spill] sm:$0xff] %v2743_v20 }
 0x172   :  { %3144 = vst [vmem:[#allocation27_spill] sm:$0xff] %v2745_v22  ;;  %3145 = vst [vmem:[#allocation28_spill] sm:$0xff] %v2748_v31 }
 0x174   :  { %v393_v32 = vpop.f32.mrb[8].mxu0  ;;  %v466_v34 = vpop.f32.mrb[8].mxu1 }
 0x175   :  { %v2750_v44 = vadd.f32 %v393_v32, %v162_v27  ;;  %v395_v55 = vpop.f32.mrb[9].mxu0  ;;  %v2753_v56 = vadd.f32 %v466_v34, %v2712_v23  ;;  %v468_v3 = vpop.f32.mrb[9].mxu1 }
 0x176   :  { %v2755_v7 = vadd.f32 %v395_v55, %v166_v30  ;;  %v397_v15 = vpop.f32.mrb[10].mxu0  ;;  %v2758_v17 = vadd.f32 %v468_v3, %v2718_v26  ;;  %v470_v19 = vpop.f32.mrb[10].mxu1 }
 0x177   :  { %3146 = vst [vmem:[#allocation29_spill] sm:$0xff] %v2750_v44  ;;  %3147 = vst [vmem:[#allocation30_spill] sm:$0xff] %v2753_v56  ;;  %v2760_v0 = vadd.f32 %v397_v15, %v162_v27  ;;  %v399_v21 = vpop.f32.mrb[11].mxu0  ;;  %v2763_v31 = vadd.f32 %v470_v19, %v2712_v23  ;;  %v472_v32 = vpop.f32.mrb[11].mxu1 }
 0x178   :  { %3148 = vst [vmem:[#allocation31_spill] sm:$0xff] %v2755_v7  ;;  %3149 = vst [vmem:[#allocation32_spill] sm:$0xff] %v2758_v17  ;;  %v2765_v44 = vadd.f32 %v399_v21, %v166_v30  ;;  %v2768_v34 = vadd.f32 %v472_v32, %v2718_v26 }
 0x179   :  { %3150 = vst [vmem:[#allocation33_spill] sm:$0xff] %v2760_v0  ;;  %3151 = vst [vmem:[#allocation34_spill] sm:$0xff] %v2763_v31 }
 0x17a   :  { %3152 = vst [vmem:[#allocation35_spill] sm:$0xff] %v2765_v44  ;;  %3153 = vst [vmem:[#allocation36_spill] sm:$0xff] %v2768_v34 }
 0x17c   :  { %v403_v56 = vpop.f32.mrb[12].mxu0  ;;  %v476_v55 = vpop.f32.mrb[12].mxu1 }
 0x17d   :  { %v2770_v7 = vadd.f32 %v403_v56, %v162_v27  ;;  %v405_v22 = vpop.f32.mrb[13].mxu0  ;;  %v2773_v3 = vadd.f32 %v476_v55, %v2712_v23  ;;  %v478_v15 = vpop.f32.mrb[13].mxu1 }
 0x17e   :  { %v2775_v0 = vadd.f32 %v405_v22, %v166_v30  ;;  %v407_v17 = vpop.f32.mrb[14].mxu0  ;;  %v2778_v19 = vadd.f32 %v478_v15, %v2718_v26  ;;  %v480_v21 = vpop.f32.mrb[14].mxu1  ;;  %v374_v22 = vadd.f32 %v2714_v24, %v162_v27  ;;  %v376_v15 = vadd.f32 %v375_v28, %v166_v30 }
 0x17f   :  { %3154 = vst [vmem:[#allocation37_spill] sm:$0xff] %v2770_v7  ;;  %3155 = vst [vmem:[#allocation38_spill] sm:$0xff] %v2773_v3  ;;  %v2780_v44 = vadd.f32 %v407_v17, %v162_v27  ;;  %v409_v32 = vpop.f32.mrb[15].mxu0  ;;  %v2783_v34 = vadd.f32 %v480_v21, %v2712_v23  ;;  %v482_v56 = vpop.f32.mrb[15].mxu1 }
 0x180   :  { %3156 = vst [vmem:[#allocation39_spill] sm:$0xff] %v2775_v0  ;;  %3157 = vst [vmem:[#allocation40_spill] sm:$0xff] %v2778_v19  ;;  %v2785_v7 = vadd.f32 %v409_v32, %v166_v30  ;;  %v2788_v55 = vadd.f32 %v482_v56, %v2718_v26  ;;  %v447_v0 = vadd.f32 %v2716_v25, %v2712_v23 }
 0x181   :  { %3158 = vst [vmem:[#allocation41_spill] sm:$0xff] %v2780_v44  ;;  %3159 = vst [vmem:[#allocation42_spill] sm:$0xff] %v2783_v34  ;;  %v449_v19 = vadd.f32 %v448_v29, %v2718_v26 }
 0x182   :  { %3160 = vst [vmem:[#allocation43_spill] sm:$0xff] %v2785_v7  ;;  %3161 = vst [vmem:[#allocation44_spill] sm:$0xff] %v2788_v55 }
 0x184   :  { %v750_v17 = vpop.f32.mrb[16].mxu0  ;;  %v791_v44 = vpop.f32.mrb[16].mxu1 }
 0x185   :  { %v798_v3 = vadd.f32 %v750_v17, %v374_v22  ;;  %v800_v31 = vadd.f32 %v791_v44, %v447_v0  ;;  %v752_v21 = vpop.f32.mrb[17].mxu0  ;;  %v793_v34 = vpop.f32.mrb[17].mxu1  ;;  %v518_v44 = vld [vmem:[#allocation8] sm:$0xff]  ;;  %v3162_v22 = vmov 0  }
 0x186   :  { %v799_v20 = vadd.f32 %v752_v21, %v376_v15  ;;  %v801_v32 = vadd.f32 %v793_v34, %v449_v19  ;;  %v754_v7 = vpop.f32.mrb[18].mxu0  ;;  %v795_v18 = vpop.f32.mrb[18].mxu1 }
 0x187   :  { %v1855_v56 = vmul.f32 -1.442695, %v798_v3  ;;  %v755_v55 = vpop.f32.mrb[19].mxu0  ;;  %v796_v16 = vpop.f32.mrb[19].mxu1  ;;  %v1857_v23 = vmul.f32 -1.442695, %v800_v31 }
 0x188   :  { %v1856_v24 = vmul.f32 -1.442695, %v799_v20 }
 0x189   :  { %2039 = vpow2.f32 %v1855_v56 }
 0x18a   :  { %2041 = vpow2.f32 %v1856_v24 }
 0x18b   :  { %2043 = vtanh.f32 %v801_v32 }
 0x18c   :  { %2045 = vpow2.f32 %v1857_v23 }
 0x193   :  { %v2040_v25 = vpop.eup %2039 }
 0x194   :  { %v811_v27 = vadd.f32 1.0, %v2040_v25  ;;  %v2042_v26 = vpop.eup %2041 }
 0x195   :  { %v812_v0 = vadd.f32 1.0, %v2042_v26  ;;  %v2044_v28 = vpop.eup %2043 }
 0x196   :  { %2047 = vrcp.f32 %v811_v27  ;;  %v2046_v29 = vpop.eup %2045 }
 0x197   :  { %2049 = vrcp.f32 %v812_v0  ;;  %v813_v34 = vadd.f32 1.0, %v2046_v29 }
 0x199   :  { %2051 = vrcp.f32 %v813_v34 }
 0x1a0   :  { %v2048_v30 = vpop.eup %2047 }
 0x1a1   :  { %v822_v18 = vmul.f32 %v2048_v30, %v2044_v28  ;;  %v2050_v7 = vpop.eup %2049 }
 0x1a2   :  { %v821_v16 = vmul.f32 %v2050_v7, %v518_v44 }
 0x1a3   :  { %v2052_v31 = vpop.eup %2051 }
 0x1a4   :  { %v2794_v20 = vadd.f32 %v822_v18, %v821_v16 }
 0x1a6   :  { %2053 = vtanh.f32 %v2794_v20 }
 0x1b0   :  { %v2054_v3 = vpop.eup %2053 }
 0x1b1   :  { %v825_v19 = vmul.f32 %v2054_v3, %v2052_v31 }
 0x1b3   :  { %v830_v55 = vpack.c.bf16 %v825_v19, %v825_v19 }
 0x1b5   :  { %864 = vmatmul.mubr.bf16.vlgmr.msra.gmra.mrb[20].mxu0 %v830_v55  ;;  %905 = vmatmul.mubr.bf16.vlgmr.msra.gmra.mrb[20].mxu1 %v830_v55 }
 0x1b6   :  { %947 = vmatpush1.bf16.msra.mxu0 %v2573_v38  ;;  %988 = vmatpush1.bf16.msra.mxu1 %v2575_v39 }
 0x1b7   :  { %948 = vmatprep.subr.bf16.mxu0 %v2579_v40  ;;  %989 = vmatprep.subr.bf16.mxu1 %v2581_v41 }
 0x1b8   :  { %978 = vmatprep.mubr.bf16.mxu0 %v3162_v22  ;;  %1019 = vmatprep.mubr.bf16.mxu1 %v3162_v22 }
 0x1ba   :  { %949 = vmatpush1.bf16.msra.mxu0 %v2583_v42  ;;  %990 = vmatpush1.bf16.msra.mxu1 %v2585_v43 }
 0x1bb   :  { %950 = vmatprep.subr.bf16.mxu0 %v2589_v46  ;;  %991 = vmatprep.subr.bf16.mxu1 %v2593_v47 }
 0x1be   :  { %951 = vmatpush1.bf16.msra.mxu0 %v2597_v49  ;;  %992 = vmatpush1.bf16.msra.mxu1 %v2599_v50 }
 0x1bf   :  { %952 = vmatprep.subr.bf16.mxu0 %v2603_v51  ;;  %993 = vmatprep.subr.bf16.mxu1 %v2607_v52 }
 0x1c2   :  { %953 = vmatpush1.bf16.msra.mxu0 %v2609_v53  ;;  %994 = vmatpush1.bf16.msra.mxu1 %v2611_v54 }
 0x1c3   :  { %954 = vmatprep.subr.bf16.mxu0 %v2617_v57  ;;  %995 = vmatprep.subr.bf16.mxu1 %v2619_v58 }
 0x1c6   :  { %955 = vmatpush1.bf16.msra.mxu0 %v2623_v59  ;;  %996 = vmatpush1.bf16.msra.mxu1 %v2625_v60 }
 0x1c7   :  { %956 = vmatprep.subr.bf16.mxu0 %v2627_v62  ;;  %997 = vmatprep.subr.bf16.mxu1 %v2629_v63 }
 0x1ca   :  { %957 = vmatpush1.bf16.msra.mxu0 %v2635_v1  ;;  %998 = vmatpush1.bf16.msra.mxu1 %v2639_v2 }
 0x1cb   :  { %958 = vmatprep.subr.bf16.mxu0 %v2643_v5  ;;  %999 = vmatprep.subr.bf16.mxu1 %v2645_v6 }
 0x1ce   :  { %959 = vmatpush1.bf16.msra.mxu0 %v2651_v8  ;;  %1000 = vmatpush1.bf16.msra.mxu1 %v2653_v9 }
 0x1cf   :  { %960 = vmatprep.subr.bf16.mxu0 %v2657_v10  ;;  %1001 = vmatprep.subr.bf16.mxu1 %v2659_v11 }
 0x1d2   :  { %961 = vmatpush1.bf16.msra.mxu0 %v2663_v12  ;;  %1002 = vmatpush1.bf16.msra.mxu1 %v2665_v13 }
 0x1d3   :  { %1061 = vmatprep.subr.bf16.mxu0 %v2569_v35  ;;  %1102 = vmatprep.subr.bf16.mxu1 %v2571_v36 }
 0x288   :  { %v865_v15 = vpop.f32.mrb[20].mxu0  ;;  %v906_v17 = vpop.f32.mrb[20].mxu1 }
 0x289   :  { %v913_v21 = vadd.f32 %v865_v15, %v2720_v33  ;;  %v915_v32 = vadd.f32 %v906_v17, %v2723_v37  ;;  %v867_v56 = vpop.f32.mrb[21].mxu0  ;;  %v908_v24 = vpop.f32.mrb[21].mxu1 }
 0x28a   :  { %v914_v23 = vadd.f32 %v867_v56, %v2725_v45  ;;  %v916_v25 = vadd.f32 %v908_v24, %v2728_v48  ;;  %v869_v27 = vpop.f32.mrb[22].mxu0  ;;  %v910_v26 = vpop.f32.mrb[22].mxu1 }
 0x28b   :  { %v1858_v0 = vmul.f32 -1.442695, %v913_v21  ;;  %v870_v28 = vpop.f32.mrb[23].mxu0  ;;  %v911_v29 = vpop.f32.mrb[23].mxu1  ;;  %v1860_v44 = vmul.f32 -1.442695, %v915_v32 }
 0x28c   :  { %v1859_v30 = vmul.f32 -1.442695, %v914_v23 }
 0x28d   :  { %2055 = vpow2.f32 %v1858_v0  ;;  %v3163_v0 = vld [vmem:[#allocation24_spill] sm:$0xff] }
 0x28e   :  { %2057 = vpow2.f32 %v1859_v30 }
 0x28f   :  { %2059 = vtanh.f32 %v916_v25 }
 0x290   :  { %2061 = vpow2.f32 %v1860_v44 }
 0x297   :  { %v2056_v18 = vpop.eup %2055 }
 0x298   :  { %v926_v7 = vadd.f32 1.0, %v2056_v18  ;;  %v2058_v33 = vpop.eup %2057 }
 0x299   :  { %v927_v37 = vadd.f32 1.0, %v2058_v33  ;;  %v2060_v45 = vpop.eup %2059 }
 0x29a   :  { %2063 = vrcp.f32 %v926_v7  ;;  %v2062_v34 = vpop.eup %2061 }
 0x29b   :  { %2065 = vrcp.f32 %v927_v37  ;;  %v928_v3 = vadd.f32 1.0, %v2062_v34 }
 0x29d   :  { %2067 = vrcp.f32 %v928_v3 }
 0x2a4   :  { %v2064_v48 = vpop.eup %2063 }
 0x2a5   :  { %v937_v16 = vmul.f32 %v2064_v48, %v2060_v45  ;;  %v2066_v31 = vpop.eup %2065 }
 0x2a6   :  { %v936_v19 = vmul.f32 %v2066_v31, %v2794_v20 }
 0x2a7   :  { %v2068_v15 = vpop.eup %2067 }
 0x2a8   :  { %v2836_v55 = vadd.f32 %v937_v16, %v936_v19 }
 0x2aa   :  { %2069 = vtanh.f32 %v2836_v55 }
 0x2b4   :  { %v2070_v17 = vpop.eup %2069 }
 0x2b5   :  { %v940_v21 = vmul.f32 %v2070_v17, %v2068_v15 }
 0x2b7   :  { %v945_v32 = vpack.c.bf16 %v940_v21, %v940_v21 }
 0x2b9   :  { %979 = vmatmul.mubr.bf16.vlgmr.msra.gmra.mrb[24].mxu0 %v945_v32  ;;  %1020 = vmatmul.mubr.bf16.vlgmr.msra.gmra.mrb[24].mxu1 %v945_v32 }
 0x2ba   :  { %1062 = vmatpush1.bf16.msra.mxu0 %v2573_v38  ;;  %1103 = vmatpush1.bf16.msra.mxu1 %v2575_v39 }
 0x2bb   :  { %1063 = vmatprep.subr.bf16.mxu0 %v2579_v40  ;;  %1104 = vmatprep.subr.bf16.mxu1 %v2581_v41 }
 0x2bc   :  { %1093 = vmatprep.mubr.bf16.mxu0 %v3162_v22  ;;  %1134 = vmatprep.mubr.bf16.mxu1 %v3162_v22 }
 0x2be   :  { %1064 = vmatpush1.bf16.msra.mxu0 %v2583_v42  ;;  %1105 = vmatpush1.bf16.msra.mxu1 %v2585_v43 }
 0x2bf   :  { %1065 = vmatprep.subr.bf16.mxu0 %v2589_v46  ;;  %1106 = vmatprep.subr.bf16.mxu1 %v2593_v47 }
 0x2c2   :  { %1066 = vmatpush1.bf16.msra.mxu0 %v2597_v49  ;;  %1107 = vmatpush1.bf16.msra.mxu1 %v2599_v50 }
 0x2c3   :  { %1067 = vmatprep.subr.bf16.mxu0 %v2603_v51  ;;  %1108 = vmatprep.subr.bf16.mxu1 %v2607_v52 }
 0x2c6   :  { %1068 = vmatpush1.bf16.msra.mxu0 %v2609_v53  ;;  %1109 = vmatpush1.bf16.msra.mxu1 %v2611_v54 }
 0x2c7   :  { %1069 = vmatprep.subr.bf16.mxu0 %v2617_v57  ;;  %1110 = vmatprep.subr.bf16.mxu1 %v2619_v58 }
 0x2ca   :  { %1070 = vmatpush1.bf16.msra.mxu0 %v2623_v59  ;;  %1111 = vmatpush1.bf16.msra.mxu1 %v2625_v60 }
 0x2cb   :  { %1071 = vmatprep.subr.bf16.mxu0 %v2627_v62  ;;  %1112 = vmatprep.subr.bf16.mxu1 %v2629_v63 }
 0x2ce   :  { %1072 = vmatpush1.bf16.msra.mxu0 %v2635_v1  ;;  %1113 = vmatpush1.bf16.msra.mxu1 %v2639_v2 }
 0x2cf   :  { %1073 = vmatprep.subr.bf16.mxu0 %v2643_v5  ;;  %1114 = vmatprep.subr.bf16.mxu1 %v2645_v6 }
 0x2d2   :  { %1074 = vmatpush1.bf16.msra.mxu0 %v2651_v8  ;;  %1115 = vmatpush1.bf16.msra.mxu1 %v2653_v9 }
 0x2d3   :  { %1075 = vmatprep.subr.bf16.mxu0 %v2657_v10  ;;  %1116 = vmatprep.subr.bf16.mxu1 %v2659_v11 }
 0x2d6   :  { %1076 = vmatpush1.bf16.msra.mxu0 %v2663_v12  ;;  %1117 = vmatpush1.bf16.msra.mxu1 %v2665_v13 }
 0x2d7   :  { %1176 = vmatprep.subr.bf16.mxu0 %v2569_v35  ;;  %1217 = vmatprep.subr.bf16.mxu1 %v2571_v36 }
 0x38c   :  { %v980_v20 = vpop.f32.mrb[24].mxu0  ;;  %v1021_v56 = vpop.f32.mrb[24].mxu1 }
 0x38d   :  { %v1028_v24 = vadd.f32 %v980_v20, %v2730_v61  ;;  %v1030_v23 = vadd.f32 %v1021_v56, %v2733_v4  ;;  %v982_v25 = vpop.f32.mrb[25].mxu0  ;;  %v1023_v27 = vpop.f32.mrb[25].mxu1 }
 0x38e   :  { %v1029_v26 = vadd.f32 %v982_v25, %v2735_v14  ;;  %v1031_v28 = vadd.f32 %v1023_v27, %v3163_v0  ;;  %v984_v29 = vpop.f32.mrb[26].mxu0  ;;  %v1025_v30 = vpop.f32.mrb[26].mxu1  ;;  %v3165_v27 = vld [vmem:[#allocation26_spill] sm:$0xff] }
 0x38f   :  { %v1861_v44 = vmul.f32 -1.442695, %v1028_v24  ;;  %v985_v18 = vpop.f32.mrb[27].mxu0  ;;  %v1026_v7 = vpop.f32.mrb[27].mxu1  ;;  %v1863_v37 = vmul.f32 -1.442695, %v1030_v23 }
 0x390   :  { %v1862_v33 = vmul.f32 -1.442695, %v1029_v26  ;;  %v3164_v23 = vld [vmem:[#allocation25_spill] sm:$0xff]  ;;  %v3166_v29 = vld [vmem:[#allocation27_spill] sm:$0xff] }
 0x391   :  { %2071 = vpow2.f32 %v1861_v44  ;;  %v3167_v44 = vld [vmem:[#allocation28_spill] sm:$0xff] }
 0x392   :  { %2073 = vpow2.f32 %v1862_v33 }
 0x393   :  { %2075 = vtanh.f32 %v1031_v28 }
 0x394   :  { %2077 = vpow2.f32 %v1863_v37 }
 0x39b   :  { %v2072_v45 = vpop.eup %2071 }
 0x39c   :  { %v1041_v34 = vadd.f32 1.0, %v2072_v45  ;;  %v2074_v61 = vpop.eup %2073 }
 0x39d   :  { %v1042_v4 = vadd.f32 1.0, %v2074_v61  ;;  %v2076_v14 = vpop.eup %2075 }
 0x39e   :  { %2079 = vrcp.f32 %v1041_v34  ;;  %v2078_v48 = vpop.eup %2077 }
 0x39f   :  { %2081 = vrcp.f32 %v1042_v4  ;;  %v1043_v19 = vadd.f32 1.0, %v2078_v48 }
 0x3a1   :  { %2083 = vrcp.f32 %v1043_v19 }
 0x3a8   :  { %v2080_v16 = vpop.eup %2079 }
 0x3a9   :  { %v1052_v31 = vmul.f32 %v2080_v16, %v2076_v14  ;;  %v2082_v3 = vpop.eup %2081 }
 0x3aa   :  { %v1051_v15 = vmul.f32 %v2082_v3, %v2836_v55 }
 0x3ab   :  { %v2084_v21 = vpop.eup %2083 }
 0x3ac   :  { %v2878_v17 = vadd.f32 %v1052_v31, %v1051_v15 }
 0x3ae   :  { %2085 = vtanh.f32 %v2878_v17 }
 0x3b8   :  { %v2086_v32 = vpop.eup %2085 }
 0x3b9   :  { %v1055_v20 = vmul.f32 %v2086_v32, %v2084_v21 }
 0x3bb   :  { %v1060_v56 = vpack.c.bf16 %v1055_v20, %v1055_v20 }
 0x3bd   :  { %1094 = vmatmul.mubr.bf16.vlgmr.msra.gmra.mrb[28].mxu0 %v1060_v56  ;;  %1135 = vmatmul.mubr.bf16.vlgmr.msra.gmra.mrb[28].mxu1 %v1060_v56 }
 0x3be   :  { %1177 = vmatpush1.bf16.msra.mxu0 %v2573_v38  ;;  %1218 = vmatpush1.bf16.msra.mxu1 %v2575_v39 }
 0x3bf   :  { %1178 = vmatprep.subr.bf16.mxu0 %v2579_v40  ;;  %1219 = vmatprep.subr.bf16.mxu1 %v2581_v41 }
 0x3c0   :  { %1208 = vmatprep.mubr.bf16.mxu0 %v3162_v22  ;;  %1249 = vmatprep.mubr.bf16.mxu1 %v3162_v22 }
 0x3c2   :  { %1179 = vmatpush1.bf16.msra.mxu0 %v2583_v42  ;;  %1220 = vmatpush1.bf16.msra.mxu1 %v2585_v43 }
 0x3c3   :  { %1180 = vmatprep.subr.bf16.mxu0 %v2589_v46  ;;  %1221 = vmatprep.subr.bf16.mxu1 %v2593_v47 }
 0x3c6   :  { %1181 = vmatpush1.bf16.msra.mxu0 %v2597_v49  ;;  %1222 = vmatpush1.bf16.msra.mxu1 %v2599_v50 }
 0x3c7   :  { %1182 = vmatprep.subr.bf16.mxu0 %v2603_v51  ;;  %1223 = vmatprep.subr.bf16.mxu1 %v2607_v52 }
 0x3ca   :  { %1183 = vmatpush1.bf16.msra.mxu0 %v2609_v53  ;;  %1224 = vmatpush1.bf16.msra.mxu1 %v2611_v54 }
 0x3cb   :  { %1184 = vmatprep.subr.bf16.mxu0 %v2617_v57  ;;  %1225 = vmatprep.subr.bf16.mxu1 %v2619_v58 }
 0x3ce   :  { %1185 = vmatpush1.bf16.msra.mxu0 %v2623_v59  ;;  %1226 = vmatpush1.bf16.msra.mxu1 %v2625_v60 }
 0x3cf   :  { %1186 = vmatprep.subr.bf16.mxu0 %v2627_v62  ;;  %1227 = vmatprep.subr.bf16.mxu1 %v2629_v63 }
 0x3d2   :  { %1187 = vmatpush1.bf16.msra.mxu0 %v2635_v1  ;;  %1228 = vmatpush1.bf16.msra.mxu1 %v2639_v2 }
 0x3d3   :  { %1188 = vmatprep.subr.bf16.mxu0 %v2643_v5  ;;  %1229 = vmatprep.subr.bf16.mxu1 %v2645_v6 }
 0x3d6   :  { %1189 = vmatpush1.bf16.msra.mxu0 %v2651_v8  ;;  %1230 = vmatpush1.bf16.msra.mxu1 %v2653_v9 }
 0x3d7   :  { %1190 = vmatprep.subr.bf16.mxu0 %v2657_v10  ;;  %1231 = vmatprep.subr.bf16.mxu1 %v2659_v11 }
 0x3da   :  { %1191 = vmatpush1.bf16.msra.mxu0 %v2663_v12  ;;  %1232 = vmatpush1.bf16.msra.mxu1 %v2665_v13 }
 0x3db   :  { %1291 = vmatprep.subr.bf16.mxu0 %v2569_v35  ;;  %1332 = vmatprep.subr.bf16.mxu1 %v2571_v36 }
 0x490   :  { %v1095_v55 = vpop.f32.mrb[28].mxu0  ;;  %v1136_v24 = vpop.f32.mrb[28].mxu1 }
 0x491   :  { %v1143_v25 = vadd.f32 %v1095_v55, %v3164_v23  ;;  %v1145_v26 = vadd.f32 %v1136_v24, %v3165_v27  ;;  %v1097_v0 = vpop.f32.mrb[29].mxu0  ;;  %v1138_v28 = vpop.f32.mrb[29].mxu1 }
 0x492   :  { %v1144_v30 = vadd.f32 %v1097_v0, %v3166_v29  ;;  %v1146_v18 = vadd.f32 %v1138_v28, %v3167_v44  ;;  %v1099_v7 = vpop.f32.mrb[30].mxu0  ;;  %v1140_v33 = vpop.f32.mrb[30].mxu1 }
 0x493   :  { %v1864_v37 = vmul.f32 -1.442695, %v1143_v25  ;;  %v1100_v45 = vpop.f32.mrb[31].mxu0  ;;  %v1141_v34 = vpop.f32.mrb[31].mxu1  ;;  %v1866_v36 = vmul.f32 -1.442695, %v1145_v26 }
 0x494   :  { %v1865_v35 = vmul.f32 -1.442695, %v1144_v30 }
 0x495   :  { %2087 = vpow2.f32 %v1864_v37 }
 0x496   :  { %2089 = vpow2.f32 %v1865_v35 }
 0x497   :  { %2091 = vtanh.f32 %v1146_v18 }
 0x498   :  { %2093 = vpow2.f32 %v1866_v36  ;;  %v2969_v36 = vld [vmem:[#allocation11] ss:$16 sps:$4 sm:$0xff]  }
 0x49f   :  { %v2088_v61 = vpop.eup %2087 }
 0x4a0   :  { %v1156_v4 = vadd.f32 1.0, %v2088_v61  ;;  %v2090_v14 = vpop.eup %2089  ;;  %v2972_v61 = vld [vmem:[#allocation11 + $0x8] ss:$16 sps:$4 sm:$0xff]  }
 0x4a1   :  { %v1157_v48 = vadd.f32 1.0, %v2090_v14  ;;  %v2092_v16 = vpop.eup %2091  ;;  %v2978_v14 = vld [vmem:[#allocation11 + $0x2c] ss:$16 sps:$4 sm:$0xff]  }
 0x4a2   :  { %2095 = vrcp.f32 %v1156_v4  ;;  %v2094_v31 = vpop.eup %2093  ;;  %v2975_v4 = vld [vmem:[#allocation11 + $0x24] ss:$16 sps:$4 sm:$0xff]  }
 0x4a3   :  { %2097 = vrcp.f32 %v1157_v48  ;;  %v1158_v21 = vadd.f32 1.0, %v2094_v31  ;;  %v2983_v48 = vld [vmem:[#allocation11 + $0x20] ss:$16 sps:$4 sm:$0xff]   ;;  %v2989_v31 = vld [vmem:[#allocation11 + $0x44] ss:$16 sps:$4 sm:$0xff]  }
 0x4a5   :  { %2099 = vrcp.f32 %v1158_v21  ;;  %v3001_v21 = vld [vmem:[#allocation11 + $0x64] ss:$16 sps:$4 sm:$0xff]  }
 0x4ac   :  { %v2096_v3 = vpop.eup %2095 }
 0x4ad   :  { %v1167_v19 = vmul.f32 %v2096_v3, %v2092_v16  ;;  %v2098_v15 = vpop.eup %2097  ;;  %v2986_v16 = vld [vmem:[#allocation11 + $0x28] ss:$16 sps:$4 sm:$0xff]   ;;  %v2992_v3 = vld [vmem:[#allocation11 + $0x4c] ss:$16 sps:$4 sm:$0xff]  }
 0x4ae   :  { %v1166_v32 = vmul.f32 %v2098_v15, %v2878_v17  ;;  %v2998_v15 = vld [vmem:[#allocation11 + $0x48] ss:$16 sps:$4 sm:$0xff]  }
 0x4af   :  { %v2100_v56 = vpop.eup %2099 }
 0x4b0   :  { %v2920_v20 = vadd.f32 %v1167_v19, %v1166_v32  ;;  %v2995_v19 = vld [vmem:[#allocation11 + $0x40] ss:$16 sps:$4 sm:$0xff]   ;;  %v3004_v32 = vld [vmem:[#allocation11 + $0x6c] ss:$16 sps:$4 sm:$0xff]  }
 0x4b2   :  { %2101 = vtanh.f32 %v2920_v20 }
 0x4bc   :  { %v2102_v55 = vpop.eup %2101 }
 0x4bd   :  { %v1170_v24 = vmul.f32 %v2102_v55, %v2100_v56  ;;  %v3010_v56 = vld [vmem:[#allocation11 + $0x68] ss:$16 sps:$4 sm:$0xff]   ;;  %v3013_v55 = vld [vmem:[#allocation11 + $0x84] ss:$16 sps:$4 sm:$0xff]  }
 0x4bf   :  { %v1175_v23 = vpack.c.bf16 %v1170_v24, %v1170_v24  ;;  %v3016_v24 = vld [vmem:[#allocation11 + $0x8c] ss:$16 sps:$4 sm:$0xff]  }
 0x4c1   :  { %1209 = vmatmul.mubr.bf16.vlgmr.msra.gmra.mrb[32].mxu0 %v1175_v23  ;;  %1250 = vmatmul.mubr.bf16.vlgmr.msra.gmra.mrb[32].mxu1 %v1175_v23  ;;  %v3019_v23 = vld [vmem:[#allocation11 + $0x80] ss:$16 sps:$4 sm:$0xff]  }
 0x4c2   :  { %1292 = vmatpush1.bf16.msra.mxu0 %v2573_v38  ;;  %1333 = vmatpush1.bf16.msra.mxu1 %v2575_v39  ;;  %v2955_v38 = vld [vmem:[#allocation11 + $0x4] ss:$16 sps:$4 sm:$0xff]   ;;  %v2958_v39 = vld [vmem:[#allocation11 + $0xc] ss:$16 sps:$4 sm:$0xff]  }
 0x4c3   :  { %1293 = vmatprep.subr.bf16.mxu0 %v2579_v40  ;;  %1334 = vmatprep.subr.bf16.mxu1 %v2581_v41 }
 0x4c4   :  { %1323 = vmatprep.mubr.bf16.mxu0 %v3162_v22  ;;  %1364 = vmatprep.mubr.bf16.mxu1 %v3162_v22 }
 0x4c6   :  { %1294 = vmatpush1.bf16.msra.mxu0 %v2583_v42  ;;  %1335 = vmatpush1.bf16.msra.mxu1 %v2585_v43  ;;  %v3168_v42 = vld [vmem:[#allocation29_spill] sm:$0xff] }
 0x4c7   :  { %1295 = vmatprep.subr.bf16.mxu0 %v2589_v46  ;;  %1336 = vmatprep.subr.bf16.mxu1 %v2593_v47  ;;  %v3169_v46 = vld [vmem:[#allocation30_spill] sm:$0xff] }
 0x4ca   :  { %1296 = vmatpush1.bf16.msra.mxu0 %v2597_v49  ;;  %1337 = vmatpush1.bf16.msra.mxu1 %v2599_v50 }
 0x4cb   :  { %1297 = vmatprep.subr.bf16.mxu0 %v2603_v51  ;;  %1338 = vmatprep.subr.bf16.mxu1 %v2607_v52  ;;  %v3170_v51 = vld [vmem:[#allocation31_spill] sm:$0xff] }
 0x4ce   :  { %1298 = vmatpush1.bf16.msra.mxu0 %v2609_v53  ;;  %1339 = vmatpush1.bf16.msra.mxu1 %v2611_v54  ;;  %v3171_v53 = vld [vmem:[#allocation32_spill] sm:$0xff] }
 0x4cf   :  { %1299 = vmatprep.subr.bf16.mxu0 %v2617_v57  ;;  %1340 = vmatprep.subr.bf16.mxu1 %v2619_v58 }
 0x4d2   :  { %1300 = vmatpush1.bf16.msra.mxu0 %v2623_v59  ;;  %1341 = vmatpush1.bf16.msra.mxu1 %v2625_v60 }
 0x4d3   :  { %1301 = vmatprep.subr.bf16.mxu0 %v2627_v62  ;;  %1342 = vmatprep.subr.bf16.mxu1 %v2629_v63 }
 0x4d6   :  { %1302 = vmatpush1.bf16.msra.mxu0 %v2635_v1  ;;  %1343 = vmatpush1.bf16.msra.mxu1 %v2639_v2 }
 0x4d7   :  { %1303 = vmatprep.subr.bf16.mxu0 %v2643_v5  ;;  %1344 = vmatprep.subr.bf16.mxu1 %v2645_v6 }
 0x4da   :  { %1304 = vmatpush1.bf16.msra.mxu0 %v2651_v8  ;;  %1345 = vmatpush1.bf16.msra.mxu1 %v2653_v9 }
 0x4db   :  { %1305 = vmatprep.subr.bf16.mxu0 %v2657_v10  ;;  %1346 = vmatprep.subr.bf16.mxu1 %v2659_v11 }
 0x4de   :  { %1306 = vmatpush1.bf16.msra.mxu0 %v2663_v12  ;;  %1347 = vmatpush1.bf16.msra.mxu1 %v2665_v13 }
 0x4df   :  { %1406 = vmatprep.subr.bf16.mxu0 %v2955_v38  ;;  %1447 = vmatprep.subr.bf16.mxu1 %v2958_v39 }
 0x594   :  { %v1210_v40 = vpop.f32.mrb[32].mxu0  ;;  %v1251_v41 = vpop.f32.mrb[32].mxu1 }
 0x595   :  { %v1258_v43 = vadd.f32 %v1210_v40, %v3168_v42  ;;  %v1260_v47 = vadd.f32 %v1251_v41, %v3169_v46  ;;  %v1212_v49 = vpop.f32.mrb[33].mxu0  ;;  %v1253_v50 = vpop.f32.mrb[33].mxu1  ;;  %v3022_v40 = vld [vmem:[#allocation11 + $0x88] ss:$16 sps:$4 sm:$0xff]   ;;  %v3025_v41 = vld [vmem:[#allocation11 + $0xa4] ss:$16 sps:$4 sm:$0xff]  }
 0x596   :  { %v1259_v52 = vadd.f32 %v1212_v49, %v3170_v51  ;;  %v1261_v54 = vadd.f32 %v1253_v50, %v3171_v53  ;;  %v1214_v57 = vpop.f32.mrb[34].mxu0  ;;  %v1255_v58 = vpop.f32.mrb[34].mxu1  ;;  %v3028_v42 = vld [vmem:[#allocation11 + $0xac] ss:$16 sps:$4 sm:$0xff]   ;;  %v3172_v46 = vld [vmem:[#allocation33_spill] sm:$0xff]  ;;  %v3174_v50 = vld [vmem:[#allocation35_spill] sm:$0xff] }
 0x597   :  { %v1867_v59 = vmul.f32 -1.442695, %v1258_v43  ;;  %v1215_v60 = vpop.f32.mrb[35].mxu0  ;;  %v1256_v62 = vpop.f32.mrb[35].mxu1  ;;  %v1869_v1 = vmul.f32 -1.442695, %v1260_v47 }
 0x598   :  { %v1868_v63 = vmul.f32 -1.442695, %v1259_v52  ;;  %v3031_v43 = vld [vmem:[#allocation11 + $0xa0] ss:$16 sps:$4 sm:$0xff]   ;;  %v3173_v47 = vld [vmem:[#allocation34_spill] sm:$0xff]  ;;  %v3175_v51 = vld [vmem:[#allocation36_spill] sm:$0xff] }
 0x599   :  { %2103 = vpow2.f32 %v1867_v59 }
 0x59a   :  { %2105 = vpow2.f32 %v1868_v63 }
 0x59b   :  { %2107 = vtanh.f32 %v1261_v54 }
 0x59c   :  { %2109 = vpow2.f32 %v1869_v1 }
 0x5a3   :  { %v2104_v17 = vpop.eup %2103 }
 0x5a4   :  { %v1271_v25 = vadd.f32 1.0, %v2104_v17  ;;  %v2106_v27 = vpop.eup %2105 }
 0x5a5   :  { %v1272_v26 = vadd.f32 1.0, %v2106_v27  ;;  %v2108_v0 = vpop.eup %2107 }
 0x5a6   :  { %2111 = vrcp.f32 %v1271_v25  ;;  %v2110_v28 = vpop.eup %2109 }
 0x5a7   :  { %2113 = vrcp.f32 %v1272_v26  ;;  %v1273_v18 = vadd.f32 1.0, %v2110_v28 }
 0x5a9   :  { %2115 = vrcp.f32 %v1273_v18  ;;  %v2191_v18 = vld [vmem:[#allocation11 + $0xc4] ss:$16 sps:$4 sm:$0xff]  }
 0x5b0   :  { %v2112_v29 = vpop.eup %2111 }
 0x5b1   :  { %v1282_v30 = vmul.f32 %v2112_v29, %v2108_v0  ;;  %v2114_v44 = vpop.eup %2113 }
 0x5b2   :  { %v1281_v7 = vmul.f32 %v2114_v44, %v2920_v20  ;;  %v3007_v20 = vld [vmem:[#allocation11 + $0x60] ss:$16 sps:$4 sm:$0xff]  }
 0x5b3   :  { %v2116_v37 = vpop.eup %2115 }
 0x5b4   :  { %v2966_v33 = vadd.f32 %v1282_v30, %v1281_v7  ;;  %v2192_v7 = vld [vmem:[#allocation11 + $0xcc] ss:$16 sps:$4 sm:$0xff]  }
 0x5b6   :  { %2117 = vtanh.f32 %v2966_v33 }
 0x5c0   :  { %v2118_v45 = vpop.eup %2117 }
 0x5c1   :  { %v1285_v34 = vmul.f32 %v2118_v45, %v2116_v37  ;;  %v2194_v37 = vld [vmem:[#allocation11 + $0xc8] ss:$16 sps:$4 sm:$0xff]   ;;  %v2195_v45 = vld [vmem:[#allocation11 + $0xe4] ss:$16 sps:$4 sm:$0xff]  }
 0x5c3   :  { %v1290_v35 = vpack.c.bf16 %v1285_v34, %v1285_v34  ;;  %v2196_v34 = vld [vmem:[#allocation11 + $0xec] ss:$16 sps:$4 sm:$0xff]  }
 0x5c5   :  { %1324 = vmatmul.mubr.bf16.vlgmr.msra.gmra.mrb[36].mxu0 %v1290_v35  ;;  %1365 = vmatmul.mubr.bf16.vlgmr.msra.gmra.mrb[36].mxu1 %v1290_v35  ;;  %v2197_v35 = vld [vmem:[#allocation11 + $0xe0] ss:$16 sps:$4 sm:$0xff]  }
 0x5c6   :  { %1407 = vmatpush1.bf16.msra.mxu0 %v2969_v36  ;;  %1448 = vmatpush1.bf16.msra.mxu1 %v2972_v61 }
 0x5c7   :  { %1408 = vmatprep.subr.bf16.mxu0 %v2975_v4  ;;  %1449 = vmatprep.subr.bf16.mxu1 %v2978_v14 }
 0x5c8   :  { %1438 = vmatprep.mubr.bf16.mxu0 %v3162_v22  ;;  %1479 = vmatprep.mubr.bf16.mxu1 %v3162_v22 }
 0x5ca   :  { %1409 = vmatpush1.bf16.msra.mxu0 %v2983_v48  ;;  %1450 = vmatpush1.bf16.msra.mxu1 %v2986_v16 }
 0x5cb   :  { %1410 = vmatprep.subr.bf16.mxu0 %v2989_v31  ;;  %1451 = vmatprep.subr.bf16.mxu1 %v2992_v3 }
 0x5ce   :  { %1411 = vmatpush1.bf16.msra.mxu0 %v2995_v19  ;;  %1452 = vmatpush1.bf16.msra.mxu1 %v2998_v15 }
 0x5cf   :  { %1412 = vmatprep.subr.bf16.mxu0 %v3001_v21  ;;  %1453 = vmatprep.subr.bf16.mxu1 %v3004_v32 }
 0x5d2   :  { %1413 = vmatpush1.bf16.msra.mxu0 %v3007_v20  ;;  %1454 = vmatpush1.bf16.msra.mxu1 %v3010_v56 }
 0x5d3   :  { %1414 = vmatprep.subr.bf16.mxu0 %v3013_v55  ;;  %1455 = vmatprep.subr.bf16.mxu1 %v3016_v24 }
 0x5d6   :  { %1415 = vmatpush1.bf16.msra.mxu0 %v3019_v23  ;;  %1456 = vmatpush1.bf16.msra.mxu1 %v3022_v40 }
 0x5d7   :  { %1416 = vmatprep.subr.bf16.mxu0 %v3025_v41  ;;  %1457 = vmatprep.subr.bf16.mxu1 %v3028_v42 }
 0x5da   :  { %1417 = vmatpush1.bf16.msra.mxu0 %v3031_v43  ;;  %1458 = vmatpush1.bf16.msra.mxu1 %v2639_v2 }
 0x5db   :  { %1418 = vmatprep.subr.bf16.mxu0 %v2643_v5  ;;  %1459 = vmatprep.subr.bf16.mxu1 %v2645_v6 }
 0x5de   :  { %1419 = vmatpush1.bf16.msra.mxu0 %v2651_v8  ;;  %1460 = vmatpush1.bf16.msra.mxu1 %v2653_v9 }
 0x5df   :  { %1420 = vmatprep.subr.bf16.mxu0 %v2657_v10  ;;  %1461 = vmatprep.subr.bf16.mxu1 %v2659_v11 }
 0x5e2   :  { %1421 = vmatpush1.bf16.msra.mxu0 %v2663_v12  ;;  %1462 = vmatpush1.bf16.msra.mxu1 %v2665_v13 }
 0x5e3   :  { %1521 = vmatprep.subr.bf16.mxu0 %v2955_v38  ;;  %1562 = vmatprep.subr.bf16.mxu1 %v2958_v39 }
 0x698   :  { %v1325_v2 = vpop.f32.mrb[36].mxu0  ;;  %v1366_v5 = vpop.f32.mrb[36].mxu1 }
 0x699   :  { %v1373_v6 = vadd.f32 %v1325_v2, %v3172_v46  ;;  %v1375_v8 = vadd.f32 %v1366_v5, %v3173_v47  ;;  %v1327_v49 = vpop.f32.mrb[37].mxu0  ;;  %v1368_v9 = vpop.f32.mrb[37].mxu1 }
 0x69a   :  { %v1374_v10 = vadd.f32 %v1327_v49, %v3174_v50  ;;  %v1376_v11 = vadd.f32 %v1368_v9, %v3175_v51  ;;  %v1329_v52 = vpop.f32.mrb[38].mxu0  ;;  %v1370_v12 = vpop.f32.mrb[38].mxu1 }
 0x69b   :  { %v1870_v53 = vmul.f32 -1.442695, %v1373_v6  ;;  %v1330_v13 = vpop.f32.mrb[39].mxu0  ;;  %v1371_v54 = vpop.f32.mrb[39].mxu1  ;;  %v1872_v39 = vmul.f32 -1.442695, %v1375_v8 }
 0x69c   :  { %v1871_v38 = vmul.f32 -1.442695, %v1374_v10  ;;  %v2031_v13 = vld [vmem:[#allocation12] sm:$0xff]   ;;  %v2422_v54 = vmov 0.0  }
 0x69d   :  { %2119 = vpow2.f32 %v1870_v53 }
 0x69e   :  { %2121 = vpow2.f32 %v1871_v38  ;;  %v2032_v38 = vld [vmem:[#allocation12 + $0x8] sm:$0xff]  }
 0x69f   :  { %2123 = vtanh.f32 %v1376_v11 }
 0x6a0   :  { %2125 = vpow2.f32 %v1872_v39  ;;  %v2033_v39 = vld [vmem:[#allocation12 + $0x10] sm:$0xff]  }
 0x6a7   :  { %v2120_v57 = vpop.eup %2119 }
 0x6a8   :  { %v1386_v58 = vadd.f32 1.0, %v2120_v57  ;;  %v2122_v59 = vpop.eup %2121  ;;  %v2034_v57 = vld [vmem:[#allocation12 + $0x18] sm:$0xff]  }
 0x6a9   :  { %v1387_v60 = vadd.f32 1.0, %v2122_v59  ;;  %v2124_v62 = vpop.eup %2123  ;;  %v2036_v59 = vld [vmem:[#allocation12 + $0x28] sm:$0xff]  }
 0x6aa   :  { %2127 = vrcp.f32 %v1386_v58  ;;  %v2126_v63 = vpop.eup %2125  ;;  %v2035_v58 = vld [vmem:[#allocation12 + $0x20] sm:$0xff]  }
 0x6ab   :  { %2129 = vrcp.f32 %v1387_v60  ;;  %v1388_v27 = vadd.f32 1.0, %v2126_v63  ;;  %v2037_v60 = vld [vmem:[#allocation12 + $0x30] sm:$0xff]  }
 0x6ad   :  { %2131 = vrcp.f32 %v1388_v27  ;;  %v3181_v27 = vld [vmem:[#allocation42_spill] sm:$0xff] }
 0x6b4   :  { %v2128_v1 = vpop.eup %2127 }
 0x6b5   :  { %v1397_v17 = vmul.f32 %v2128_v1, %v2124_v62  ;;  %v2130_v25 = vpop.eup %2129  ;;  %v2038_v62 = vld [vmem:[#allocation12 + $0x38] sm:$0xff]  }
 0x6b6   :  { %v1396_v26 = vmul.f32 %v2130_v25, %v2966_v33  ;;  %v2193_v33 = vld [vmem:[#allocation11 + $0xc0] ss:$16 sps:$4 sm:$0xff]  }
 0x6b7   :  { %v2132_v28 = vpop.eup %2131 }
 0x6b8   :  { %v3050_v0 = vadd.f32 %v1397_v17, %v1396_v26  ;;  %v3180_v17 = vld [vmem:[#allocation41_spill] sm:$0xff] }
 0x6ba   :  { %2133 = vtanh.f32 %v3050_v0 }
 0x6c4   :  { %v2134_v29 = vpop.eup %2133 }
 0x6c5   :  { %v1400_v30 = vmul.f32 %v2134_v29, %v2132_v28  ;;  %v3182_v29 = vld [vmem:[#allocation43_spill] sm:$0xff] }
 0x6c7   :  { %v1405_v44 = vpack.c.bf16 %v1400_v30, %v1400_v30 }
 0x6c9   :  { %1439 = vmatmul.mubr.bf16.vlgmr.msra.gmra.mrb[40].mxu0 %v1405_v44  ;;  %1480 = vmatmul.mubr.bf16.vlgmr.msra.gmra.mrb[40].mxu1 %v1405_v44  ;;  %v3183_v44 = vld [vmem:[#allocation44_spill] sm:$0xff] }
 0x6ca   :  { %1522 = vmatpush1.bf16.msra.mxu0 %v2969_v36  ;;  %1563 = vmatpush1.bf16.msra.mxu1 %v2972_v61  ;;  %v2198_v36 = vld [vmem:[#allocation11 + $0xe8] ss:$16 sps:$4 sm:$0xff]  }
 0x6cb   :  { %1523 = vmatprep.subr.bf16.mxu0 %v2975_v4  ;;  %1564 = vmatprep.subr.bf16.mxu1 %v2978_v14  ;;  %v3176_v14 = vld [vmem:[#allocation37_spill] sm:$0xff] }
 0x6cc   :  { %1553 = vmatprep.mubr.bf16.mxu0 %v3162_v22  ;;  %1594 = vmatprep.mubr.bf16.mxu1 %v3162_v22  ;;  %v2190_v22 = vld [vmem:[#allocation11 + $0xa8] ss:$16 sps:$4 sm:$0xff]  }
 0x6ce   :  { %1524 = vmatpush1.bf16.msra.mxu0 %v2983_v48  ;;  %1565 = vmatpush1.bf16.msra.mxu1 %v2986_v16  ;;  %v3177_v16 = vld [vmem:[#allocation38_spill] sm:$0xff] }
 0x6cf   :  { %1525 = vmatprep.subr.bf16.mxu0 %v2989_v31  ;;  %1566 = vmatprep.subr.bf16.mxu1 %v2992_v3 }
 0x6d2   :  { %1526 = vmatpush1.bf16.msra.mxu0 %v2995_v19  ;;  %1567 = vmatpush1.bf16.msra.mxu1 %v2998_v15  ;;  %v3178_v15 = vld [vmem:[#allocation39_spill] sm:$0xff] }
 0x6d3   :  { %1527 = vmatprep.subr.bf16.mxu0 %v3001_v21  ;;  %1568 = vmatprep.subr.bf16.mxu1 %v3004_v32  ;;  %v3179_v32 = vld [vmem:[#allocation40_spill] sm:$0xff] }
 0x6d6   :  { %1528 = vmatpush1.bf16.msra.mxu0 %v3007_v20  ;;  %1569 = vmatpush1.bf16.msra.mxu1 %v3010_v56 }
 0x6d7   :  { %1529 = vmatprep.subr.bf16.mxu0 %v3013_v55  ;;  %1570 = vmatprep.subr.bf16.mxu1 %v3016_v24 }
 0x6da   :  { %1530 = vmatpush1.bf16.msra.mxu0 %v3019_v23  ;;  %1571 = vmatpush1.bf16.msra.mxu1 %v3022_v40 }
 0x6db   :  { %1531 = vmatprep.subr.bf16.mxu0 %v3025_v41  ;;  %1572 = vmatprep.subr.bf16.mxu1 %v3028_v42 }
 0x6de   :  { %1532 = vmatpush1.bf16.msra.mxu0 %v3031_v43  ;;  %1573 = vmatpush1.bf16.msra.mxu1 %v2190_v22 }
 0x6df   :  { %1533 = vmatprep.subr.bf16.mxu0 %v2191_v18  ;;  %1574 = vmatprep.subr.bf16.mxu1 %v2192_v7 }
 0x6e2   :  { %1534 = vmatpush1.bf16.msra.mxu0 %v2193_v33  ;;  %1575 = vmatpush1.bf16.msra.mxu1 %v2194_v37 }
 0x6e3   :  { %1535 = vmatprep.subr.bf16.mxu0 %v2195_v45  ;;  %1576 = vmatprep.subr.bf16.mxu1 %v2196_v34 }
 0x6e6   :  { %1536 = vmatpush1.bf16.msra.mxu0 %v2197_v35  ;;  %1577 = vmatpush1.bf16.msra.mxu1 %v2198_v36 }
 0x6e7   :  { %1897 = vmatprep.subr.bf16.mxu0 %v2422_v54 }
 0x79c   :  { %v1440_v61 = vpop.f32.mrb[40].mxu0  ;;  %v1481_v4 = vpop.f32.mrb[40].mxu1 }
 0x79d   :  { %v1488_v48 = vadd.f32 %v1440_v61, %v3176_v14  ;;  %v1490_v31 = vadd.f32 %v1481_v4, %v3177_v16  ;;  %v1442_v3 = vpop.f32.mrb[41].mxu0  ;;  %v1483_v19 = vpop.f32.mrb[41].mxu1 }
 0x79e   :  { %v1489_v21 = vadd.f32 %v1442_v3, %v3178_v15  ;;  %v1491_v20 = vadd.f32 %v1483_v19, %v3179_v32  ;;  %v1444_v56 = vpop.f32.mrb[42].mxu0  ;;  %v1485_v55 = vpop.f32.mrb[42].mxu1 }
 0x79f   :  { %v1873_v24 = vmul.f32 -1.442695, %v1488_v48  ;;  %v1445_v23 = vpop.f32.mrb[43].mxu0  ;;  %v1486_v40 = vpop.f32.mrb[43].mxu1  ;;  %v1875_v42 = vmul.f32 -1.442695, %v1490_v31 }
 0x7a0   :  { %v1874_v41 = vmul.f32 -1.442695, %v1489_v21 }
 0x7a1   :  { %2135 = vpow2.f32 %v1873_v24 }
 0x7a2   :  { %2137 = vpow2.f32 %v1874_v41 }
 0x7a3   :  { %2139 = vtanh.f32 %v1491_v20 }
 0x7a4   :  { %2141 = vpow2.f32 %v1875_v42 }
 0x7ab   :  { %v2136_v43 = vpop.eup %2135 }
 0x7ac   :  { %v1501_v2 = vadd.f32 1.0, %v2136_v43  ;;  %v2138_v5 = vpop.eup %2137 }
 0x7ad   :  { %v1502_v46 = vadd.f32 1.0, %v2138_v5  ;;  %v2140_v6 = vpop.eup %2139 }
 0x7ae   :  { %2143 = vrcp.f32 %v1501_v2  ;;  %v2142_v47 = vpop.eup %2141 }
 0x7af   :  { %2145 = vrcp.f32 %v1502_v46  ;;  %v1503_v50 = vadd.f32 1.0, %v2142_v47 }
 0x7b1   :  { %2147 = vrcp.f32 %v1503_v50 }
 0x7b8   :  { %v2144_v8 = vpop.eup %2143 }
 0x7b9   :  { %v1512_v49 = vmul.f32 %v2144_v8, %v2140_v6  ;;  %v2146_v9 = vpop.eup %2145 }
 0x7ba   :  { %v1511_v10 = vmul.f32 %v2146_v9, %v3050_v0 }
 0x7bb   :  { %v2148_v11 = vpop.eup %2147 }
 0x7bc   :  { %v3081_v51 = vadd.f32 %v1512_v49, %v1511_v10 }
 0x7be   :  { %2149 = vtanh.f32 %v3081_v51 }
 0x7c8   :  { %v2150_v52 = vpop.eup %2149 }
 0x7c9   :  { %v1515_v12 = vmul.f32 %v2150_v52, %v2148_v11 }
 0x7cb   :  { %v1520_v53 = vpack.c.bf16 %v1515_v12, %v1515_v12 }
 0x7cd   :  { %1554 = vmatmul.mubr.bf16.vlgmr.msra.gmra.mrb[44].mxu0 %v1520_v53  ;;  %1595 = vmatmul.mubr.bf16.vlgmr.msra.gmra.mrb[44].mxu1 %v1520_v53 }
 0x7ce   :  { %1898 = vmatpush3.bf16.msra.mxu0 %v2031_v13  ;;  %1913 = vmatprep.mubr.msk.bf16.mxu0 %vm2423_vm0, %v2422_v54 }
 0x7cf   :  { %1899 = vmatprep.subr.bf16.mxu0 %v2422_v54 }
 0x7d2   :  { %1900 = vmatpush3.bf16.msra.mxu0 %v2032_v38 }
 0x7d3   :  { %1901 = vmatprep.subr.bf16.mxu0 %v2422_v54 }
 0x7d6   :  { %1902 = vmatpush3.bf16.msra.mxu0 %v2033_v39 }
 0x7d7   :  { %1903 = vmatprep.subr.bf16.mxu0 %v2422_v54 }
 0x7da   :  { %1904 = vmatpush3.bf16.msra.mxu0 %v2034_v57 }
 0x7db   :  { %1905 = vmatprep.subr.bf16.mxu0 %v2422_v54 }
 0x7de   :  { %1906 = vmatpush3.bf16.msra.mxu0 %v2035_v58 }
 0x7df   :  { %1907 = vmatprep.subr.bf16.mxu0 %v2422_v54 }
 0x7e2   :  { %1908 = vmatpush3.bf16.msra.mxu0 %v2036_v59 }
 0x7e3   :  { %1909 = vmatprep.subr.bf16.mxu0 %v2422_v54 }
 0x7e6   :  { %1910 = vmatpush3.bf16.msra.mxu0 %v2037_v60 }
 0x7e7   :  { %1911 = vmatprep.subr.bf16.mxu0 %v2422_v54 }
 0x7ea   :  { %1912 = vmatpush3.bf16.msra.mxu0 %v2038_v62 }
 0x8a0   :  { %v1555_v63 = vpop.f32.mrb[44].mxu0  ;;  %v1596_v1 = vpop.f32.mrb[44].mxu1 }
 0x8a1   :  { %v1603_v25 = vadd.f32 %v1555_v63, %v3180_v17  ;;  %v1605_v26 = vadd.f32 %v1596_v1, %v3181_v27  ;;  %v1557_v0 = vpop.f32.mrb[45].mxu0  ;;  %v1598_v28 = vpop.f32.mrb[45].mxu1 }
 0x8a2   :  { %v1604_v30 = vadd.f32 %v1557_v0, %v3182_v29  ;;  %v1606_v22 = vadd.f32 %v1598_v28, %v3183_v44  ;;  %v1559_v18 = vpop.f32.mrb[46].mxu0  ;;  %v1600_v7 = vpop.f32.mrb[46].mxu1 }
 0x8a3   :  { %v1876_v33 = vmul.f32 -1.442695, %v1603_v25  ;;  %v1560_v37 = vpop.f32.mrb[47].mxu0  ;;  %v1601_v45 = vpop.f32.mrb[47].mxu1  ;;  %v1878_v35 = vmul.f32 -1.442695, %v1605_v26 }
 0x8a4   :  { %v1877_v34 = vmul.f32 -1.442695, %v1604_v30 }
 0x8a5   :  { %2151 = vpow2.f32 %v1876_v33 }
 0x8a6   :  { %2153 = vpow2.f32 %v1877_v34 }
 0x8a7   :  { %2155 = vtanh.f32 %v1606_v22 }
 0x8a8   :  { %2157 = vpow2.f32 %v1878_v35 }
 0x8af   :  { %v2152_v36 = vpop.eup %2151 }
 0x8b0   :  { %v1616_v61 = vadd.f32 1.0, %v2152_v36  ;;  %v2154_v4 = vpop.eup %2153 }
 0x8b1   :  { %v1617_v14 = vadd.f32 1.0, %v2154_v4  ;;  %v2156_v48 = vpop.eup %2155 }
 0x8b2   :  { %2159 = vrcp.f32 %v1616_v61  ;;  %v2158_v16 = vpop.eup %2157 }
 0x8b3   :  { %2161 = vrcp.f32 %v1617_v14  ;;  %v1618_v15 = vadd.f32 1.0, %v2158_v16 }
 0x8b5   :  { %2163 = vrcp.f32 %v1618_v15 }
 0x8bc   :  { %v2160_v31 = vpop.eup %2159 }
 0x8bd   :  { %v1627_v3 = vmul.f32 %v2160_v31, %v2156_v48  ;;  %v2162_v19 = vpop.eup %2161 }
 0x8be   :  { %v1626_v21 = vmul.f32 %v2162_v19, %v3081_v51 }
 0x8bf   :  { %v2164_v20 = vpop.eup %2163 }
 0x8c0   :  { %v1628_v32 = vadd.f32 %v1627_v3, %v1626_v21 }
 0x8c2   :  { %2165 = vtanh.f32 %v1628_v32  ;;  %1632 = vst [vmem:[#allocation17] sm:$0xff] %v1628_v32 }
 0x8cc   :  { %v2166_v56 = vpop.eup %2165 }
 0x8cd   :  { %v1630_v55 = vmul.f32 %v2166_v56, %v2164_v20 }
 0x8cf   :  { %v1633_v24 = vpack.c.bf16 %v1630_v55, %v1630_v55  ;;  %1631 = vst [vmem:[#allocation15] sm:$0xff] %v1630_v55 }
 0x8d1   :  { %1914 = vmatmul.mubr.bf16.vlgmr.msra.gmra.mrb[48].mxu0 %v1633_v24 }
 0x8d2   :  { %2342 = shalt.err (!%p2339_p10)
}
 0x8d3   :  { %s2343_s16 = scalar_lea.hbm %s3137_s9, 128 }
 0x8d4   :  { %p2344_p11 = scmp.ne.s32.totalorder %s3137_s9, %s2343_s16  ;;  %p2347_p12 = scmp.lt.u32.totalorder %s2343_s16, %s3137_s9 }
 0x8d6   :  { %p2349_p13 = pnand %p2347_p12, %p2344_p11 }
 0x8d8   :  { %2352 = shalt.err (!%p2349_p13)
}
 0x8d9   :  { %1765 = dma.vmem_to_hbm [thread:$0]  %s1763_s26, 128, %s3137_s9, [#allocation16]  }
 0x8da   :  { %s2425_s17 = smov [#allocation17]  }
 0x8db   :  { %s1772_s18 = sshll.u32 %s2425_s17, 4  ;;  %s1773_s18 = int_to_ptr.vmem [resolvable:$true] %s1772_s18 }
 0x8dc   :  { %s2353_s19 = scalar_lea.vmem %s1773_s18, 128  ;;  %p2358_p1 = scmp.lt.s32.totalorder %s1773_s18, %s1773_s18 }
 0x8dd   :  { %p2354_p0 = scmp.ne.s32.totalorder %s1773_s18, %s2353_s19  ;;  %p2359_p2 = scmp.lt.s32.totalorder %s2353_s19, %s2353_s19 }
 0x8df   :  { %p2360_p3 = por %p2359_p2, %p2358_p1 }
 0x8e1   :  { %p2361_p4 = pnand %p2360_p3, %p2354_p0 }
 0x8e3   :  { %2364 = shalt.err (!%p2361_p4)
}
 0x8e4   :  { %s2365_s23 = scalar_lea.hbm %s3138_s10, 128 }
 0x8e5   :  { %p2366_p5 = scmp.ne.s32.totalorder %s3138_s10, %s2365_s23  ;;  %p2369_p6 = scmp.lt.u32.totalorder %s2365_s23, %s3138_s10 }
 0x8e7   :  { %p2371_p7 = pnand %p2369_p6, %p2366_p5 }
 0x8e9   :  { %2374 = shalt.err (!%p2371_p7)
}
 0x8ea   :  { %1775 = dma.vmem_to_hbm [thread:$0]  %s1773_s18, 128, %s3138_s10, [#allocation16]   ;;  %v1879_v23 = vld [vmem:[%s3135_s7] ss:$0 sm:$0xff] }
 0x8eb   :  { %s2426_s6 = smov [#allocation14]  }
 0x8ec   :  { %s1752_s25 = sshll.u32 %s2426_s6, 4  ;;  %s1753_s25 = int_to_ptr.vmem [resolvable:$true] %s1752_s25 }
 0x8ed   :  { %s2375_s5 = scalar_lea.vmem %s1753_s25, 128  ;;  %p2380_p9 = scmp.lt.s32.totalorder %s1753_s25, %s1753_s25 }
 0x8ee   :  { %p2376_p8 = scmp.ne.s32.totalorder %s1753_s25, %s2375_s5  ;;  %p2381_p10 = scmp.lt.s32.totalorder %s2375_s5, %s2375_s5 }
 0x8f0   :  { %p2382_p11 = por %p2381_p10, %p2380_p9 }
 0x8f2   :  { %p2383_p12 = pnand %p2382_p11, %p2376_p8 }
 0x9a4   :  { %v1739_v40 = vpop.f32.mrb[48].mxu0 }
 0x9a5   :  { %v1740_v41 = vadd.f32 %v1879_v23, %v1739_v40  ;;  %v1915_v42 = vpop.f32.mrb[49].mxu0 }
 0x9a6   :  { %v1742_v43 = vpop.f32.mrb[50].mxu0 }
 0x9a7   :  { %1745 = vst [vmem:[#allocation14] sm:$0xff] %v1740_v41  ;;  %v1916_v2 = vpop.f32.mrb[51].mxu0 }
 0x9a8   :  { %2386 = shalt.err (!%p2383_p12)
}
 0x9a9   :  { %s2387_s7 = scalar_lea.hbm %s3136_s8, 128 }
 0x9aa   :  { %p2388_p13 = scmp.ne.s32.totalorder %s3136_s8, %s2387_s7  ;;  %p2391_p0 = scmp.lt.u32.totalorder %s2387_s7, %s3136_s8 }
 0x9ac   :  { %p2393_p1 = pnand %p2391_p0, %p2388_p13 }
 0x9ae   :  { %2396 = shalt.err (!%p2393_p1)
}
 0x9af   :  { %1755 = dma.vmem_to_hbm [thread:$0]  %s1753_s25, 128, %s3136_s8, [#allocation5]  }
 0x9b0   :  { %2405 = dma.done.wait [#allocation5], 128  }
 0x9b1   :  { %2406 = vsyncadd [#allocation5], 4294967168 }
 0x9b2   :  { %2407 = dma.done.wait [#allocation16], 256  }
 0x9b3   :  { %2408 = vsyncadd [#allocation16], 4294967040 }
 0x9b4   :  { %1785 = vsyncpa [#allocation4], 1 }
 0x9b5   :  { %1786 = vsyncpa [#allocation7], 1 }
 0x9b6   :  { %1787 = vsyncpa [#allocation10], 1 }
 0x9b7   :  { %1788 = vsyncpa [#allocation13], 1 }
 0x9b8   :  { %1789 = vsyncpa [#allocation5], 1 }
 0x9b9   :  { %1790 = vsyncpa [#allocation16], 1 }

</bundles_post_ra>
